<compile_context>
chip_gen: v7x
topology: tpu7x:2x2x1
jax: 0.10.0
libtpu: 0.0.40
codegen_flags: <defaults>
</compile_context>

<pallas_src>
import numpy as np
import jax
import jax.numpy as jnp
from jax.experimental import pallas as pl
from jax.experimental.pallas import tpu as pltpu


def _round_up(x, m):
    return ((x + m - 1) // m) * m


# ---------------------------------------------------------------------------
# 1) Gabor filter-bank generation (Pallas elementwise kernel).
#    g(x,y) = exp(-(x'^2+y'^2)/(2*sigma^2)) * cos(omega*x' + phase)
#    x' =  x*cos(theta) + y*sin(theta),  y' = -x*sin(theta) + y*cos(theta)
# ---------------------------------------------------------------------------
def _gabor_weight_kernel(theta_ref, omega_ref, sigma_ref, phase_ref,
                         yy_ref, xx_ref, w_ref):
    p, k2 = w_ref.shape
    theta = jnp.broadcast_to(theta_ref[...], (p, k2))   # (P,1) -> (P,K2)
    omega = jnp.broadcast_to(omega_ref[...], (p, k2))
    sigma = jnp.broadcast_to(sigma_ref[...], (p, k2))
    phase = jnp.broadcast_to(phase_ref[...], (p, k2))
    xx = jnp.broadcast_to(xx_ref[...], (p, k2))         # (1,K2) -> (P,K2)
    yy = jnp.broadcast_to(yy_ref[...], (p, k2))
    ct = jnp.cos(theta)                                  # computed once, reused
    st = jnp.sin(theta)
    x_rot = xx * ct + yy * st
    y_rot = yy * ct - xx * st
    inv_two_sigma_sq = 0.5 / (sigma * sigma)
    envelope = jnp.exp(-(x_rot * x_rot + y_rot * y_rot) * inv_two_sigma_sq)
    carrier = jnp.cos(omega * x_rot + phase)
    w_ref[...] = (envelope * carrier).astype(w_ref.dtype)


def build_gabor_weights(theta, omega, sigma, phase, kernel_size):
    """theta/omega/sigma/phase: (n_out, in_ch) -> weights (n_out, in_ch, k, k) f32."""
    n_out, c = theta.shape
    p = n_out * c
    k2 = kernel_size * kernel_size
    half = (kernel_size - 1) / 2.0
    coords = jnp.arange(kernel_size, dtype=jnp.float32) - half
    yy, xx = jnp.meshgrid(coords, coords, indexing="ij")
    yy = yy.reshape(1, k2)
    xx = xx.reshape(1, k2)

    def col(a):
        return a.reshape(p, 1).astype(jnp.float32)

    w_flat = pl.pallas_call(
        _gabor_weight_kernel,
        out_shape=jax.ShapeDtypeStruct((p, k2), jnp.float32),
    )(col(theta), col(omega), col(sigma), col(phase), yy, xx)
    return w_flat.reshape(n_out, c, kernel_size, kernel_size)


# ---------------------------------------------------------------------------
# 2) Convolution as im2col + single fused MXU GEMM (Pallas kernel).
# ---------------------------------------------------------------------------
def _im2col_gemm_kernel(p_ref, w_ref, b_ref, o_ref):
    # w_ref: (n_out_pad, K_pad) bf16, p_ref: (K_pad, TM) bf16 -> MXU, f32 acc.
    acc = jnp.dot(w_ref[...], p_ref[...], preferred_element_type=jnp.float32)
    o_ref[...] = (acc + b_ref[...]).astype(o_ref.dtype)   # f32 bias add


def reg_gabor_conv2d(x, theta, omega, sigma, phase, bias, *, kernel_size,
                     stride=1, padding=0, compute_dtype=jnp.bfloat16,
                     lane_tile=512):
    """Forward of RegGaborConv2d. x: (N, C, H, W) -> (N, n_theta*n_omega, H_out, W_out)."""
    n, c, h, w = x.shape
    n_out = theta.shape[0]
    k = kernel_size
    k2 = k * k

    # --- Gabor filter bank, packed for the GEMM: (n_out, C*k*k) ---------------
    w4 = build_gabor_weights(theta, omega, sigma, phase, k)          # f32 OIHW
    kdim = c * k2
    k_pad = _round_up(kdim, 128)          # MXU contraction dim padded to 128
    n_out_pad = _round_up(n_out, 8)       # sublane-aligned M side
    w_packed = w4.reshape(n_out, kdim).astype(compute_dtype)
    w_packed = jnp.pad(w_packed, ((0, n_out_pad - n_out), (0, k_pad - kdim)))

    # --- im2col (wrapper-side layout plumbing, fused by XLA) ------------------
    h_out = (h + 2 * padding - k) // stride + 1
    w_out = (w + 2 * padding - k) // stride + 1
    x_c = x.astype(compute_dtype)                         # bf16 MXU operand
    xp = jnp.pad(x_c, ((0, 0), (0, 0), (padding, padding), (padding, padding)))
    cols = []
    for kh in range(k):
        for kw in range(k):
            cols.append(jax.lax.slice(
                xp, (0, 0, kh, kw),
                (n, c, kh + (h_out - 1) * stride + 1,
                 kw + (w_out - 1) * stride + 1),
                (1, 1, stride, stride)))
    patches = jnp.stack(cols, axis=2)                     # (N, C, k*k, Ho, Wo)
    patches = patches.reshape(n, kdim, h_out * w_out)     # ordering matches w4
    patches = jnp.transpose(patches, (1, 0, 2)).reshape(kdim, n * h_out * w_out)

    m_total = n * h_out * w_out                           # batch folded in lanes
    tm = min(lane_tile, _round_up(m_total, 128))          # lane-dense free tile
    m_pad = _round_up(m_total, tm)
    patches = jnp.pad(patches, ((0, k_pad - kdim), (0, m_pad - m_total)))

    if bias is None:
        bias = jnp.zeros((n_out,), jnp.float32)
    bias_col = jnp.pad(bias.astype(jnp.float32),
                       (0, n_out_pad - n_out)).reshape(n_out_pad, 1)

    grid_m = m_pad // tm
    out_flat = pl.pallas_call(
        _im2col_gemm_kernel,
        out_shape=jax.ShapeDtypeStruct((n_out_pad, m_pad), x.dtype),
        grid=(grid_m,),
        in_specs=[
            pl.BlockSpec((k_pad, tm), lambda i: (0, i)),          # patches
            pl.BlockSpec((n_out_pad, k_pad), lambda i: (0, 0)),   # weights
            pl.BlockSpec((n_out_pad, 1), lambda i: (0, 0)),       # bias (f32)
        ],
        out_specs=pl.BlockSpec((n_out_pad, tm), lambda i: (0, i)),
        compiler_params=pltpu.CompilerParams(
            dimension_semantics=("parallel",)),
    )(patches, w_packed, bias_col)

    out = out_flat[:n_out, :m_total].reshape(n_out, n, h_out, w_out)
    return jnp.transpose(out, (1, 0, 2, 3))               # back to NCHW


# ---------------------------------------------------------------------------
# Deterministic parameter initialization (mirrors the module's __init__ shapes).
# NOTE: the original get_theta/get_omega/get_sigma/get_phase sources are not
# provided; we use the standard "even" Gabor-layer init (evenly spaced
# orientations, octave-spaced frequencies, sigma = pi/omega, random phase).
# TODO(synk): swap in the exact get_* initializers if their definitions become available.
# ---------------------------------------------------------------------------
def init_params(in_channels, n_theta, n_omega, kernel_size, key):
    n_out = n_theta * n_omega
    thetas = jnp.arange(n_theta, dtype=jnp.float32) * (jnp.pi / n_theta)
    omegas = (jnp.pi / 2.0) * (jnp.sqrt(2.0) **
                               (-jnp.arange(n_omega, dtype=jnp.float32)))
    theta_vec = jnp.repeat(thetas, n_omega)          # (n_out,)
    omega_vec = jnp.tile(omegas, n_theta)            # (n_out,)
    theta = jnp.broadcast_to(theta_vec[:, None], (n_out, in_channels))
    omega = jnp.broadcast_to(omega_vec[:, None], (n_out, in_channels))
    sigma = jnp.pi / omega                           # even sigma init
    phase = jax.random.uniform(key, (n_out, in_channels),
                               minval=0.0, maxval=2.0 * jnp.pi,
                               dtype=jnp.float32)    # even_initial=False -> random
    bias = jnp.zeros((n_out,), jnp.float32)          # use_bias=True
    return theta, omega, sigma, phase, bias


if __name__ == "__main__":
    key = jax.random.PRNGKey(0)
    k_phase, k_x = jax.random.split(key)

    in_channels, n_theta, n_omega = 4, 4, 3          # n_out = 12
    kernel_size, stride, padding = 5, 1, 2

    theta, omega, sigma, phase, bias = init_params(
        in_channels, n_theta, n_omega, kernel_size, k_phase)

    x = jax.random.normal(k_x, (2, in_channels, 16, 16), dtype=jnp.float32)

    out = reg_gabor_conv2d(x, theta, omega, sigma, phase, bias,
                           kernel_size=kernel_size, stride=stride,
                           padding=padding)
    out = jax.block_until_ready(out)
    assert out.shape == (2, n_theta * n_omega, 16, 16)

    # Cross-check against the XLA conv reference, using the same bf16-quantized
    # operands the MXU sees (f32 accumulation on both sides).
    w4 = build_gabor_weights(theta, omega, sigma, phase, kernel_size)
    w4_q = w4.astype(jnp.bfloat16).astype(jnp.float32)
    x_q = x.astype(jnp.bfloat16).astype(jnp.float32)
    ref = jax.lax.conv_general_dilated(
        x_q, w4_q, window_strides=(stride, stride),
        padding=[(padding, padding), (padding, padding)],
        dimension_numbers=("NCHW", "OIHW", "NCHW"),
        precision=jax.lax.Precision.HIGHEST)
    ref = ref + bias.reshape(1, -1, 1, 1)
    np.testing.assert_allclose(np.asarray(out), np.asarray(ref),
                               rtol=1e-3, atol=1e-3)

    print("KERNEL_OK")
</pallas_src>

<mosaic_0001>
module attributes {stable_mosaic.version = 11 : i64} {
  func.func @_gabor_weight_kernel(%arg0: memref<48x1xf32, #tpu.memory_space<vmem>>, %arg1: memref<48x1xf32, #tpu.memory_space<vmem>>, %arg2: memref<48x1xf32, #tpu.memory_space<vmem>>, %arg3: memref<48x1xf32, #tpu.memory_space<vmem>>, %arg4: memref<1x25xf32, #tpu.memory_space<vmem>>, %arg5: memref<1x25xf32, #tpu.memory_space<vmem>>, %arg6: memref<48x25xf32, #tpu.memory_space<vmem>>) attributes {dimension_semantics = [], scalar_prefetch = 0 : i64, scratch_operands = 0 : i64, tpu.core_type = #tpu.core_type<tc>} {
    %c0 = arith.constant 0 : index
    %c0_0 = arith.constant 0 : index
    %0 = vector.load %arg0[%c0, %c0_0] : memref<48x1xf32, #tpu.memory_space<vmem>>, vector<48x1xf32>
    %1 = vector.shape_cast %0 : vector<48x1xf32> to vector<48x1xf32>
    %2 = vector.broadcast %1 : vector<48x1xf32> to vector<48x25xf32>
    %c0_1 = arith.constant 0 : index
    %c0_2 = arith.constant 0 : index
    %3 = vector.load %arg1[%c0_1, %c0_2] : memref<48x1xf32, #tpu.memory_space<vmem>>, vector<48x1xf32>
    %4 = vector.shape_cast %3 : vector<48x1xf32> to vector<48x1xf32>
    %5 = vector.broadcast %4 : vector<48x1xf32> to vector<48x25xf32>
    %c0_3 = arith.constant 0 : index
    %c0_4 = arith.constant 0 : index
    %6 = vector.load %arg2[%c0_3, %c0_4] : memref<48x1xf32, #tpu.memory_space<vmem>>, vector<48x1xf32>
    %7 = vector.shape_cast %6 : vector<48x1xf32> to vector<48x1xf32>
    %8 = vector.broadcast %7 : vector<48x1xf32> to vector<48x25xf32>
    %c0_5 = arith.constant 0 : index
    %c0_6 = arith.constant 0 : index
    %9 = vector.load %arg3[%c0_5, %c0_6] : memref<48x1xf32, #tpu.memory_space<vmem>>, vector<48x1xf32>
    %10 = vector.shape_cast %9 : vector<48x1xf32> to vector<48x1xf32>
    %11 = vector.broadcast %10 : vector<48x1xf32> to vector<48x25xf32>
    %c0_7 = arith.constant 0 : index
    %c0_8 = arith.constant 0 : index
    %12 = vector.load %arg5[%c0_7, %c0_8] : memref<1x25xf32, #tpu.memory_space<vmem>>, vector<1x25xf32>
    %13 = vector.shape_cast %12 : vector<1x25xf32> to vector<1x25xf32>
    %14 = vector.broadcast %13 : vector<1x25xf32> to vector<48x25xf32>
    %c0_9 = arith.constant 0 : index
    %c0_10 = arith.constant 0 : index
    %15 = vector.load %arg4[%c0_9, %c0_10] : memref<1x25xf32, #tpu.memory_space<vmem>>, vector<1x25xf32>
    %16 = vector.shape_cast %15 : vector<1x25xf32> to vector<1x25xf32>
    %17 = vector.broadcast %16 : vector<1x25xf32> to vector<48x25xf32>
    %18 = math.cos %2 : vector<48x25xf32>
    %19 = math.sin %2 : vector<48x25xf32>
    %20 = arith.mulf %14, %18 : vector<48x25xf32>
    %21 = arith.mulf %17, %19 : vector<48x25xf32>
    %22 = arith.addf %20, %21 : vector<48x25xf32>
    %23 = arith.mulf %17, %18 : vector<48x25xf32>
    %24 = arith.mulf %14, %19 : vector<48x25xf32>
    %25 = arith.subf %23, %24 : vector<48x25xf32>
    %26 = arith.mulf %8, %8 : vector<48x25xf32>
    %cst = arith.constant 5.000000e-01 : f32
    %27 = vector.broadcast %cst : f32 to vector<48x25xf32>
    %28 = arith.divf %27, %26 : vector<48x25xf32>
    %29 = arith.mulf %22, %22 : vector<48x25xf32>
    %30 = arith.mulf %25, %25 : vector<48x25xf32>
    %31 = arith.addf %29, %30 : vector<48x25xf32>
    %cst_11 = arith.constant 0.000000e+00 : f32
    %32 = vector.broadcast %cst_11 : f32 to vector<48x25xf32>
    %33 = arith.subf %32, %31 : vector<48x25xf32>
    %34 = arith.mulf %33, %28 : vector<48x25xf32>
    %35 = math.exp %34 : vector<48x25xf32>
    %36 = arith.mulf %5, %22 : vector<48x25xf32>
    %37 = arith.addf %36, %11 : vector<48x25xf32>
    %38 = math.cos %37 : vector<48x25xf32>
    %39 = arith.mulf %35, %38 : vector<48x25xf32>
    %c0_12 = arith.constant 0 : index
    %c0_13 = arith.constant 0 : index
    %40 = vector.load %arg6[%c0_12, %c0_13] : memref<48x25xf32, #tpu.memory_space<vmem>>, vector<48x25xf32>
    tpu.vector_store %arg6[%c0_12, %c0_13], %39 {strides = array<i32>} : memref<48x25xf32, #tpu.memory_space<vmem>>, vector<48x25xf32>,
    return
  }
}

</mosaic_0001>

<bundles_post_ra>
// kernel: tpu_custom_call.1
= control target key start
LH: loop header
LB: loop body
LE: loop exit
PB: predicated region body
PF: predicated region fallthrough
CT: control target
= control target key end

     0   :  { %v2369_v0 = vmov 0   ;;  %v2370_v54 = vmov 683565275   ;;  %v2371_v58 = vmov 2475754826   ;;  %s3678_s0 = inlined_call_operand.vmem [shape: f32[48,1], index: 0, kind: input, shape index: {}]   ;;  %s3679_s1 = inlined_call_operand.vmem [shape: f32[48,1], index: 1, kind: input, shape index: {}]   ;;  %s3680_s3 = inlined_call_operand.vmem [shape: f32[48,1], index: 3, kind: input, shape index: {}]   ;;  %s3681_s2 = inlined_call_operand.vmem [shape: f32[48,1], index: 2, kind: input, shape index: {}]   ;;  %s3682_s5 = inlined_call_operand.vmem [shape: f32[1,25], index: 5, kind: input, shape index: {}]   ;;  %s3683_s4 = inlined_call_operand.vmem [shape: f32[1,25], index: 4, kind: input, shape index: {}]   ;;  %s3684_s6 = inlined_call_operand.vmem [shape: f32[48,25], index: 6, kind: output, shape index: {}]  }
   0x1   :  { %2296 = vset.pattern.permute.xlu1 %v2369_v0  ;;  %2295 = vset.pattern.permute.xlu0 %v2369_v0  ;;  %v25_v1 = vld [vmem:[%s3678_s0 + $0x10] sm:$0xff]  ;;  %v23_v2 = vld [vmem:[%s3678_s0] sm:$0xff]  ;;  %v26_v3 = vld [vmem:[%s3678_s0 + $0x18] sm:$0xff]  ;;  %v2372_v60 = vmov 2131351028  }
   0x2   :  { %41 = vperm.xlu1 %2296, %v25_v1   ;;  %31 = vperm.xlu0 %2295, %v23_v2   ;;  %v24_v4 = vld [vmem:[%s3678_s0 + $0x8] sm:$0xff]  ;;  %v27_v6 = vld [vmem:[%s3678_s0 + $0x20] sm:$0xff]  ;;  %v62_v9 = vld [vmem:[%s3679_s1 + $0x18] sm:$0xff]  ;;  %v2373_v62 = vmov 2102212464  }
   0x3   :  { %v28_v5 = vld [vmem:[%s3678_s0 + $0x28] sm:$0xff]  ;;  %v59_v8 = vld [vmem:[%s3679_s1] sm:$0xff]  ;;  %v61_v10 = vld [vmem:[%s3679_s1 + $0x10] sm:$0xff]  ;;  %v2374_v0 = vmov 920167782  }
   0x4   :  { %v60_v7 = vld [vmem:[%s3679_s1 + $0x8] sm:$0xff]  ;;  %v63_v12 = vld [vmem:[%s3679_s1 + $0x20] sm:$0xff]  ;;  %v134_v15 = vld [vmem:[%s3680_s3 + $0x18] sm:$0xff] }
   0x5   :  { %v64_v11 = vld [vmem:[%s3679_s1 + $0x28] sm:$0xff]  ;;  %v131_v14 = vld [vmem:[%s3680_s3] sm:$0xff]  ;;  %v133_v16 = vld [vmem:[%s3680_s3 + $0x10] sm:$0xff] }
   0x6   :  { %46 = vperm.xlu1 %2296, %v26_v3   ;;  %36 = vperm.xlu0 %2295, %v24_v4   ;;  %v132_v13 = vld [vmem:[%s3680_s3 + $0x8] sm:$0xff]  ;;  %v135_v18 = vld [vmem:[%s3680_s3 + $0x20] sm:$0xff]  ;;  %v98_v21 = vld [vmem:[%s3681_s2 + $0x18] sm:$0xff] }
   0x7   :  { %v136_v17 = vld [vmem:[%s3680_s3 + $0x28] sm:$0xff]  ;;  %v95_v20 = vld [vmem:[%s3681_s2] sm:$0xff]  ;;  %v97_v22 = vld [vmem:[%s3681_s2 + $0x10] sm:$0xff] }
   0x8   :  { %v96_v19 = vld [vmem:[%s3681_s2 + $0x8] sm:$0xff]  ;;  %v99_v24 = vld [vmem:[%s3681_s2 + $0x20] sm:$0xff] }
   0x9   :  { %v100_v23 = vld [vmem:[%s3681_s2 + $0x28] sm:$0xff] }
   0xa   :  { %56 = vperm.xlu1 %2296, %v28_v5   ;;  %51 = vperm.xlu0 %2295, %v27_v6  }
   0xe   :  { %72 = vperm.xlu1 %2296, %v60_v7   ;;  %67 = vperm.xlu0 %2295, %v59_v8   ;;  %v3686_v7 = vmov 1326507024  }
  0x12   :  { %82 = vperm.xlu1 %2296, %v62_v9   ;;  %77 = vperm.xlu0 %2295, %v61_v10  }
  0x16   :  { %92 = vperm.xlu1 %2296, %v64_v11   ;;  %87 = vperm.xlu0 %2295, %v63_v12  }
  0x1a   :  { %144 = vperm.xlu1 %2296, %v132_v13   ;;  %139 = vperm.xlu0 %2295, %v131_v14  }
  0x1e   :  { %154 = vperm.xlu1 %2296, %v134_v15   ;;  %149 = vperm.xlu0 %2295, %v133_v16  }
  0x22   :  { %164 = vperm.xlu1 %2296, %v136_v17   ;;  %159 = vperm.xlu0 %2295, %v135_v18  }
  0x26   :  { %108 = vperm.xlu1 %2296, %v96_v19   ;;  %103 = vperm.xlu0 %2295, %v95_v20  }
  0x2a   :  { %118 = vperm.xlu1 %2296, %v98_v21   ;;  %113 = vperm.xlu0 %2295, %v97_v22  }
  0x2e   :  { %128 = vperm.xlu1 %2296, %v100_v23   ;;  %123 = vperm.xlu0 %2295, %v99_v24  }
  0x81   :  { %v2483_v25 = vpop.permute.xlu1 %41  ;;  %v2485_v26 = vpop.permute.xlu0 %31 }
  0x82   :  { %v387_v27 = vand.u32 2147483647, %v2483_v25  ;;  %v390_v28 = vand.u32 2139095040, %v2483_v25  ;;  %v181_v29 = vand.u32 2147483647, %v2485_v26  ;;  %v184_v30 = vand.u32 2139095040, %v2485_v26 }
  0x84   :  { %v391_v31 = vshrl.u32 %v390_v28, 23  ;;  %v394_v32 = vand.u32 8388607, %v387_v27  ;;  %v185_v33 = vshrl.u32 %v184_v30, 23  ;;  %v188_v34 = vand.u32 8388607, %v181_v29 }
  0x85   :  { %v2495_v35 = vpop.permute.xlu1 %46 }
  0x86   :  { %v2176_v36 = vadd.s32 4294967169, %v391_v31  ;;  %v2168_v37 = vadd.s32 4294967169, %v185_v33  ;;  %v493_v38 = vand.u32 2139095040, %v2495_v35  ;;  %v395_v40 = vor.u32 8388608, %v394_v32 }
  0x87   :  { %v189_v41 = vor.u32 8388608, %v188_v34  ;;  %v490_v52 = vand.u32 2147483647, %v2495_v35 }
  0x88   :  { %v397_v39 = vadd.s32 1, %v2176_v36  ;;  %v191_v42 = vadd.s32 1, %v2168_v37  ;;  %v494_v43 = vshrl.u32 %v493_v38, 23  ;;  %v2498_v49 = vshll.u32 %v395_v40, 8 }
  0x89   :  { %v2502_v51 = vshll.u32 %v189_v41, 8 }
  0x8a   :  { %vm398_vm0 = vcmp.gt.s32.totalorder %v397_v39, 0  ;;  %vm192_vm1 = vcmp.gt.s32.totalorder %v191_v42, 0  ;;  %v2180_v45 = vadd.s32 4294967169, %v494_v43 }
  0x8b   :  { %v399_v44 = vsel %vm398_vm0, %v397_v39, 0  ;;  %v193_v48 = vsel %vm192_vm1, %v191_v42, 0  ;;  %vm389_vm1 = vcmp.lt.s32.totalorder %v2483_v25, 0 }
  0x8c   :  { %v400_v46 = vshrl.u32 %v399_v44, 5  ;;  %v401_v47 = vand.u32 31, %v399_v44  ;;  %v2500_v50 = vshrl.u32 %v193_v48, 5  ;;  %v195_v56 = vand.u32 31, %v193_v48 }
  0x8d   :  { %v2506_v57 = vadd.s32 1, %v2180_v45 }
  0x8e   :  { %v402_v53 = vsub.s32 32, %v401_v47  ;;  %v404_v55 = vshll.u32 %v2370_v54, %v401_v47  ;;  %v407_v59 = vshll.u32 %v2371_v58, %v401_v47  ;;  %v410_v61 = vshll.u32 %v2372_v60, %v401_v47 }
  0x8f   :  { %v413_v63 = vshll.u32 %v2373_v62, %v401_v47  ;;  %v416_v1 = vshll.u32 %v2374_v0, %v401_v47  ;;  %vm419_vm2 = vcmp.lt.s32.totalorder %v400_v46, 1  ;;  %vm420_vm3 = vcmp.lt.s32.totalorder %v400_v46, 2 }
  0x90   :  { %v405_v2 = vshrl.u32 %v2371_v58, %v402_v53  ;;  %v408_v3 = vshrl.u32 %v2372_v60, %v402_v53  ;;  %v411_v4 = vshrl.u32 %v2373_v62, %v402_v53  ;;  %v403_v5 = vshrl.u32 %v2370_v54, %v402_v53 }
  0x91   :  { %v414_v6 = vshrl.u32 %v2374_v0, %v402_v53  ;;  %v417_v8 = vshrl.u32 %v3686_v7, %v402_v53  ;;  %v196_v12 = vsub.s32 32, %v195_v56  ;;  %vm421_vm4 = vcmp.lt.s32.totalorder %v400_v46, 3 }
  0x92   :  { %v406_v9 = vor.u32 %v405_v2, %v404_v55  ;;  %v409_v10 = vor.u32 %v408_v3, %v407_v59  ;;  %v412_v11 = vor.u32 %v411_v4, %v410_v61  ;;  %vm422_vm5 = vcmp.lt.s32.totalorder %v400_v46, 4 }
  0x93   :  { %v415_v13 = vor.u32 %v414_v6, %v413_v63  ;;  %v418_v14 = vor.u32 %v417_v8, %v416_v1  ;;  %v198_v22 = vshll.u32 %v2370_v54, %v195_v56  ;;  %v199_v28 = vshrl.u32 %v2371_v58, %v196_v12 }
  0x94   :  { %v423_v15 = vsel %vm419_vm2, %v403_v5, %v406_v9  ;;  %v424_v16 = vsel %vm422_vm5, %v412_v11, 2102212464  ;;  %v427_v17 = vsel %vm419_vm2, %v406_v9, %v409_v10  ;;  %v431_v18 = vsel %vm419_vm2, %v409_v10, %v412_v11 }
  0x95   :  { %v425_v19 = vsel %vm421_vm4, %v409_v10, %v424_v16  ;;  %v428_v20 = vsel %vm422_vm5, %v415_v13, 920167782  ;;  %v432_v21 = vsel %vm422_vm5, %v418_v14, 1326507024  ;;  %v201_v30 = vshll.u32 %v2371_v58, %v195_v56 }
  0x96   :  { %v429_v23 = vsel %vm421_vm4, %v412_v11, %v428_v20  ;;  %v433_v24 = vsel %vm421_vm4, %v415_v13, %v432_v21  ;;  %v426_v31 = vsel %vm420_vm3, %v423_v15, %v425_v19  ;;  %v202_v34 = vshrl.u32 %v2372_v60, %v196_v12 }
  0x97   :  { %v430_v32 = vsel %vm420_vm3, %v427_v17, %v429_v23  ;;  %v434_v33 = vsel %vm420_vm3, %v431_v18, %v433_v24  ;;  %v200_v40 = vor.u32 %v199_v28, %v198_v22  ;;  %v204_v42 = vshll.u32 %v2372_v60, %v195_v56 }
  0x98   :  { %v2529_v36 = vmul.u32.u64.low %v2498_v49, %v434_v33  ;;  %v2530_v37 = vmul.u32.u64.high %v2498_v49, %v434_v33, %v2529_v36  ;;  %v2533_v38 = vmul.u32.u64.low %v2498_v49, %v430_v32  ;;  %v2534_v39 = vmul.u32.u64.high %v2498_v49, %v430_v32, %v2533_v38 }
  0x99   :  { %v203_v41 = vor.u32 %v202_v34, %v201_v30  ;;  %v205_v43 = vshrl.u32 %v2373_v62, %v196_v12  ;;  %v197_v44 = vshrl.u32 %v2370_v54, %v196_v12  ;;  %v207_v45 = vshll.u32 %v2373_v62, %v195_v56 }
  0x9a   :  { %v208_v46 = vshrl.u32 %v2374_v0, %v196_v12  ;;  %v211_v47 = vshrl.u32 %v3686_v7, %v196_v12  ;;  %v442_v48 = vmul.u32 %v2498_v49, %v426_v31  ;;  %v210_v55 = vshll.u32 %v2374_v0, %v195_v56 }
  0x9b   :  { %v206_v53 = vor.u32 %v205_v43, %v204_v42  ;;  %vm213_vm6 = vcmp.lt.s32.totalorder %v2500_v50, 1  ;;  %vm444_vm7 = vc.u32 %v2530_v37, %v2533_v38  ;;  %v445_v59 = vadd.s32 1, %v2534_v39 }
  0x9c   :  { %v209_v61 = vor.u32 %v208_v46, %v207_v45  ;;  %vm214_vm8 = vcmp.lt.s32.totalorder %v2500_v50, 2  ;;  %v212_v63 = vor.u32 %v211_v47, %v210_v55  ;;  %vm215_vm9 = vcmp.lt.s32.totalorder %v2500_v50, 3 }
  0x9d   :  { %vm216_vm10 = vcmp.lt.s32.totalorder %v2500_v50, 4  ;;  %v221_v1 = vsel %vm213_vm6, %v200_v40, %v203_v41  ;;  %v446_v49 = vsel %vm444_vm7, %v445_v59, %v2534_v39  ;;  %v225_v3 = vsel %vm213_vm6, %v203_v41, %v206_v53 }
  0x9e   :  { %v218_v2 = vsel %vm216_vm10, %v206_v53, 2102212464  ;;  %v222_v56 = vsel %vm216_vm10, %v209_v61, 920167782  ;;  %v447_v4 = vadd.s32 %v446_v49, %v442_v48  ;;  %v217_v5 = vsel %vm213_vm6, %v197_v44, %v200_v40 }
  0x9f   :  { %v223_v6 = vsel %vm215_vm9, %v206_v53, %v222_v56  ;;  %v226_v8 = vsel %vm216_vm10, %v212_v63, 1326507024  ;;  %v219_v9 = vsel %vm215_vm9, %v203_v41, %v218_v2  ;;  %vm501_vm11 = vcmp.gt.s32.totalorder %v2506_v57, 0 }
  0xa0   :  { %v224_v10 = vsel %vm214_vm8, %v221_v1, %v223_v6  ;;  %v227_v11 = vsel %vm215_vm9, %v209_v61, %v226_v8  ;;  %v448_v12 = vadd.s32 536870912, %v447_v4  ;;  %v502_v18 = vsel %vm501_vm11, %v2506_v57, 0  ;;  %v2579_v57 = vpop.permute.xlu0 %36 }
  0xa1   :  { %v228_v13 = vsel %vm214_vm8, %v225_v3, %v227_v11  ;;  %v2559_v14 = vmul.u32.u64.low %v2502_v51, %v224_v10  ;;  %v2560_v15 = vmul.u32.u64.high %v2502_v51, %v224_v10, %v2559_v14  ;;  %v220_v20 = vsel %vm214_vm8, %v217_v5, %v219_v9 }
  0xa2   :  { %v2564_v16 = vmul.u32.u64.low %v2502_v51, %v228_v13  ;;  %v2565_v17 = vmul.u32.u64.high %v2502_v51, %v228_v13, %v2564_v16  ;;  %v2568_v19 = vshrl.u32 %v448_v12, 30  ;;  %v504_v21 = vand.u32 31, %v502_v18 }
  0xa3   :  { %v239_v23 = vadd.s32 1, %v2560_v15  ;;  %v497_v24 = vand.u32 8388607, %v490_v52  ;;  %v236_v30 = vmul.u32 %v2502_v51, %v220_v20  ;;  %v2587_v40 = vshrl.u32 %v502_v18, 5 }
  0xa4   :  { %v450_v22 = vshll.u32 %v2568_v19, 30  ;;  %v505_v28 = vsub.s32 32, %v504_v21  ;;  %vm238_vm12 = vc.u32 %v2565_v17, %v2559_v14  ;;  %v287_v51 = vand.u32 2139095040, %v2579_v57 }
  0xa5   :  { %v240_v50 = vsel %vm238_vm12, %v239_v23, %v2560_v15  ;;  %v498_v39 = vor.u32 8388608, %v497_v24  ;;  %v507_v42 = vshll.u32 %v2370_v54, %v504_v21  ;;  %v510_v43 = vshll.u32 %v2371_v58, %v504_v21 }
  0xa6   :  { %v2581_v31 = vsub.s32 %v447_v4, %v450_v22  ;;  %v241_v32 = vadd.s32 %v240_v50, %v236_v30  ;;  %v508_v33 = vshrl.u32 %v2371_v58, %v505_v28  ;;  %v511_v34 = vshrl.u32 %v2372_v60, %v505_v28 }
  0xa7   :  { %v514_v44 = vshrl.u32 %v2373_v62, %v505_v28  ;;  %v513_v46 = vshll.u32 %v2372_v60, %v504_v21  ;;  %v516_v47 = vshll.u32 %v2373_v62, %v504_v21  ;;  %v517_v48 = vshrl.u32 %v2374_v0, %v505_v28 }
  0xa8   :  { %v453_v36 = vsub.s32 0, %v2581_v31  ;;  %v242_v41 = vadd.s32 536870912, %v241_v32  ;;  %v509_v55 = vor.u32 %v508_v33, %v507_v42  ;;  %v512_v59 = vor.u32 %v511_v34, %v510_v43 }
  0xa9   :  { %v515_v63 = vor.u32 %v514_v44, %v513_v46  ;;  %v518_v1 = vor.u32 %v517_v48, %v516_v47  ;;  %v520_v49 = vshrl.u32 %v3686_v7, %v505_v28  ;;  %v2601_v56 = vshll.u32 %v498_v39, 8 }
  0xaa   :  { %v2177_v45 = vmin.u32 %v453_v36, %v2581_v31  ;;  %v2597_v53 = vshrl.u32 %v242_v41, 30  ;;  %v284_v3 = vand.u32 2147483647, %v2579_v57  ;;  %v288_v4 = vshrl.u32 %v287_v51, 23 }
  0xab   :  { %v443_v5 = vadd.s32 %v2533_v38, %v2530_v37  ;;  %v519_v8 = vshll.u32 %v2374_v0, %v504_v21  ;;  %vm525_vm13 = vcmp.lt.s32.totalorder %v2587_v40, 4  ;;  %vm522_vm14 = vcmp.lt.s32.totalorder %v2587_v40, 1 }
  0xac   :  { %v455_v61 = vclz %v2177_v45  ;;  %v244_v2 = vshll.u32 %v2597_v53, 30  ;;  %vm524_vm15 = vcmp.lt.s32.totalorder %v2587_v40, 3  ;;  %v531_v10 = vsel %vm525_vm13, %v518_v1, 920167782 }
  0xad   :  { %v521_v11 = vor.u32 %v520_v49, %v519_v8  ;;  %v530_v12 = vsel %vm522_vm14, %v509_v55, %v512_v59  ;;  %v532_v37 = vsel %vm524_vm15, %v515_v63, %v531_v10  ;;  %v506_v15 = vshrl.u32 %v2370_v54, %v505_v28  ;;  %v2666_v10 = vpop.permute.xlu1 %56 }
  0xae   :  { %v2178_v6 = vadd.s32 4294967294, %v455_v61  ;;  %v2608_v9 = vsub.s32 %v241_v32, %v244_v2  ;;  %v527_v16 = vsel %vm525_vm13, %v515_v63, 2102212464  ;;  %vm523_vm2 = vcmp.lt.s32.totalorder %v2587_v40, 2 }
  0xaf   :  { %v2172_v21 = vadd.s32 4294967169, %v288_v4  ;;  %v526_v23 = vsel %vm522_vm14, %v506_v15, %v509_v55  ;;  %v533_v24 = vsel %vm523_vm2, %v530_v12, %v532_v37  ;;  %v534_v28 = vsel %vm522_vm14, %v512_v59, %v515_v63 }
  0xb0   :  { %vm2179_vm0 = vcmp.lt.s32.totalorder %v2178_v6, 0  ;;  %v247_v13 = vsub.s32 0, %v2608_v9  ;;  %v528_v32 = vsel %vm524_vm15, %v512_v59, %v527_v16  ;;  %v535_v33 = vsel %vm525_vm13, %v521_v11, 1326507024 }
  0xb1   :  { %v458_v38 = vsel %vm2179_vm0, 0, %v2178_v6  ;;  %v536_v36 = vsel %vm524_vm15, %v518_v1, %v535_v33  ;;  %v2638_v39 = vmul.u32.u64.low %v2601_v56, %v533_v24  ;;  %v2639_v51 = vmul.u32.u64.high %v2601_v56, %v533_v24, %v2638_v39 }
  0xb2   :  { %v459_v18 = vsub.s32 32, %v458_v38  ;;  %v463_v20 = vsub.s32 4294967266, %v458_v38  ;;  %v2169_v22 = vmin.u32 %v247_v13, %v2608_v9  ;;  %v473_v42 = vsub.s32 4, %v2568_v19 }
  0xb3   :  { %v537_v43 = vsel %vm523_vm2, %v534_v28, %v536_v36  ;;  %v294_v44 = vadd.s32 1, %v2172_v21  ;;  %v460_v45 = vshll.u32 %v2581_v31, %v458_v38  ;;  %vm183_vm3 = vcmp.lt.s32.totalorder %v2485_v26, 0 }
  0xb4   :  { %v461_v30 = vshrl.u32 %v443_v5, %v459_v18  ;;  %v464_v50 = vadd.s32 127, %v463_v20  ;;  %v249_v34 = vclz %v2169_v22  ;;  %v529_v59 = vsel %vm523_vm2, %v526_v23, %v528_v32 }
  0xb5   :  { %v2647_v47 = vmul.u32.u64.low %v2601_v56, %v537_v43  ;;  %v2648_v48 = vmul.u32.u64.high %v2601_v56, %v537_v43, %v2647_v47  ;;  %vm295_vm4 = vcmp.gt.s32.totalorder %v294_v44, 0  ;;  %v548_v63 = vadd.s32 1, %v2639_v51 }
  0xb6   :  { %v465_v41 = vshll.u32 %v464_v50, 23  ;;  %v2170_v46 = vadd.s32 4294967294, %v249_v34  ;;  %v462_v61 = vor.u32 %v461_v30, %v460_v45  ;;  %v296_v1 = vsel %vm295_vm4, %v294_v44, 0 }
  0xb7   :  { %vm2656_vm6 = vcmp.le.f32.partialorder %v387_v27, 0.7853982  ;;  %v291_v2 = vand.u32 8388607, %v284_v3  ;;  %v298_v4 = vand.u32 31, %v296_v1  ;;  %v474_v40 = vsel %vm389_vm1, %v473_v42, %v2568_v19 }
  0xb8   :  { %v466_v55 = vor.u32 4788187, %v465_v41  ;;  %vm2171_vm5 = vcmp.lt.s32.totalorder %v2170_v46, 0  ;;  %v267_v8 = vsub.s32 4, %v2597_v53  ;;  %v545_v27 = vmul.u32 %v2601_v56, %v529_v59 }
  0xb9   :  { %v252_v49 = vsel %vm2171_vm5, 0, %v2170_v46  ;;  %vm547_vm7 = vc.u32 %v2648_v48, %v2638_v39  ;;  %v299_v12 = vsub.s32 32, %v298_v4  ;;  %v469_v37 = vcvt.s32.f32 %v462_v61 }
  0xba   :  { %v467_v5 = vand.u32 2147483647, %v466_v55  ;;  %v257_v6 = vsub.s32 4294967266, %v252_v49  ;;  %v253_v11 = vsub.s32 32, %v252_v49  ;;  %vm2673_vm8 = vcmp.le.f32.partialorder %v181_v29, 0.7853982 }
  0xbb   :  { %v549_v13 = vsel %vm547_vm7, %v548_v63, %v2639_v51  ;;  %v237_v15 = vadd.s32 %v2559_v14, %v2565_v17  ;;  %v292_v18 = vor.u32 8388608, %v291_v2  ;;  %v696_v56 = vand.u32 2147483647, %v2666_v10 }
  0xbc   :  { %v258_v19 = vadd.s32 127, %v257_v6  ;;  %v550_v16 = vadd.s32 %v549_v13, %v545_v27  ;;  %v470_v20 = vmul.f32 %v469_v37, %v467_v5  ;;  %v2683_v21 = vsel %vm2656_vm6, 0, %v474_v40 }
  0xbd   :  { %v699_v29 = vand.u32 2139095040, %v2666_v10  ;;  %v255_v23 = vshrl.u32 %v237_v15, %v253_v11  ;;  %v268_v24 = vsel %vm183_vm3, %v267_v8, %v2597_v53  ;;  %v302_v14 = vshrl.u32 %v2371_v58, %v299_v12 }
  0xbe   :  { %v259_v22 = vshll.u32 %v258_v19, 23  ;;  %v551_v28 = vadd.s32 536870912, %v550_v16  ;;  %v254_v17 = vshll.u32 %v2608_v9, %v252_v49  ;;  %v297_v30 = vshrl.u32 %v296_v1, 5 }
  0xbf   :  { %v305_v50 = vshrl.u32 %v2372_v60, %v299_v12  ;;  %v308_v32 = vshrl.u32 %v2373_v62, %v299_v12  ;;  %v301_v36 = vshll.u32 %v2370_v54, %v298_v4  ;;  %v304_v51 = vshll.u32 %v2371_v58, %v298_v4 }
  0xc0   :  { %v260_v33 = vor.u32 4788187, %v259_v22  ;;  %v2693_v34 = vshrl.u32 %v551_v28, 30  ;;  %v471_v41 = vxor.u32 2147483648, %v470_v20  ;;  %v307_v53 = vshll.u32 %v2372_v60, %v298_v4 }
  0xc1   :  { %v310_v42 = vshll.u32 %v2373_v62, %v298_v4  ;;  %v311_v43 = vshrl.u32 %v2374_v0, %v299_v12  ;;  %v256_v9 = vor.u32 %v255_v23, %v254_v17  ;;  %v303_v45 = vor.u32 %v302_v14, %v301_v36 }
  0xc2   :  { %v553_v44 = vshll.u32 %v2693_v34, 30  ;;  %v314_v46 = vshrl.u32 %v3686_v7, %v299_v12  ;;  %v306_v47 = vor.u32 %v305_v50, %v304_v51  ;;  %v309_v55 = vor.u32 %v308_v32, %v307_v53 }
  0xc3   :  { %v312_v59 = vor.u32 %v311_v43, %v310_v42  ;;  %v313_v61 = vshll.u32 %v2374_v0, %v298_v4  ;;  %v261_v63 = vand.u32 2147483647, %v260_v33  ;;  %v2705_v1 = vsel %vm2673_vm8, 0, %v268_v24 }
  0xc4   :  { %v2707_v49 = vsub.s32 %v550_v16, %v553_v44  ;;  %v2709_v2 = vshll.u32 %v292_v18, 8  ;;  %v472_v5 = vsel %vm389_vm1, %v471_v41, %v470_v20  ;;  %v300_v40 = vshrl.u32 %v2370_v54, %v299_v12 }
  0xc5   :  { %v315_v6 = vor.u32 %v314_v46, %v313_v61  ;;  %v700_v8 = vshrl.u32 %v699_v29, 23  ;;  %v263_v11 = vcvt.s32.f32 %v256_v9  ;;  %vm492_vm9 = vcmp.lt.s32.totalorder %v2495_v35, 0 }
  0xc6   :  { %v556_v4 = vsub.s32 0, %v2707_v49  ;;  %vm316_vm10 = vcmp.lt.s32.totalorder %v297_v30, 1  ;;  %vm319_vm11 = vcmp.lt.s32.totalorder %v297_v30, 4  ;;  %vm318_vm12 = vcmp.lt.s32.totalorder %v297_v30, 3 }
  0xc7   :  { %v321_v27 = vsel %vm319_vm11, %v309_v55, 2102212464  ;;  %v324_v37 = vsel %vm316_vm10, %v303_v45, %v306_v47  ;;  %v325_v19 = vsel %vm319_vm11, %v312_v59, 920167782  ;;  %v264_v13 = vmul.f32 %v263_v11, %v261_v63 }
  0xc8   :  { %v2181_v15 = vmin.u32 %v556_v4, %v2707_v49  ;;  %vm317_vm13 = vcmp.lt.s32.totalorder %v297_v30, 2  ;;  %v326_v16 = vsel %vm318_vm12, %v309_v55, %v325_v19  ;;  %v576_v12 = vsub.s32 4, %v2693_v34 }
  0xc9   :  { %v327_v18 = vsel %vm317_vm13, %v324_v37, %v326_v16  ;;  %v328_v20 = vsel %vm316_vm10, %v306_v47, %v309_v55  ;;  %v329_v22 = vsel %vm319_vm11, %v315_v6, 1326507024  ;;  %v320_v23 = vsel %vm316_vm10, %v300_v40, %v303_v45 }
  0xca   :  { %v558_v29 = vclz %v2181_v15  ;;  %v322_v24 = vsel %vm318_vm12, %v306_v47, %v321_v27  ;;  %v330_v28 = vsel %vm318_vm12, %v312_v59, %v329_v22  ;;  %vm2721_vm14 = vcmp.le.f32.partialorder %v490_v52, 0.7853982  ;;  %v2752_v47 = vpop.permute.xlu0 %51 }
  0xcb   :  { %v331_v17 = vsel %vm317_vm13, %v328_v20, %v330_v28  ;;  %v2727_v50 = vmul.u32.u64.low %v2709_v2, %v327_v18  ;;  %v2728_v32 = vmul.u32.u64.high %v2709_v2, %v327_v18, %v2727_v50  ;;  %v2188_v33 = vadd.s32 4294967169, %v700_v8 }
  0xcc   :  { %v265_v36 = vxor.u32 2147483648, %v264_v13  ;;  %v2182_v51 = vadd.s32 4294967294, %v558_v29  ;;  %v2732_v41 = vmul.u32.u64.low %v2709_v2, %v331_v17  ;;  %v2733_v53 = vmul.u32.u64.high %v2709_v2, %v331_v17, %v2732_v41 }
  0xcd   :  { %v2736_v42 = vand.u32 3, %v2683_v21  ;;  %v2739_v52 = vadd.s32 3, %v2683_v21  ;;  %v323_v43 = vsel %vm317_vm13, %v320_v23, %v322_v24  ;;  %v706_v9 = vadd.s32 1, %v2188_v33 }
  0xce   :  { %v2745_v44 = vsel %vm2656_vm6, %v2483_v25, %v472_v5  ;;  %v2748_v45 = vand.u32 3, %v2705_v1  ;;  %v546_v46 = vadd.s32 %v2638_v39, %v2648_v48  ;;  %vm2183_vm15 = vcmp.lt.s32.totalorder %v2182_v51, 0 }
  0xcf   :  { %v561_v55 = vsel %vm2183_vm15, 0, %v2182_v51  ;;  %v577_v21 = vsel %vm492_vm9, %v576_v12, %v2693_v34  ;;  %v342_v30 = vadd.s32 1, %v2728_v32  ;;  %vm707_vm0 = vcmp.gt.s32.totalorder %v706_v9, 0 }
  0xd0   :  { %v266_v31 = vsel %vm183_vm3, %v265_v36, %v264_v13  ;;  %v562_v59 = vsub.s32 32, %v561_v55  ;;  %v566_v61 = vsub.s32 4294967266, %v561_v55  ;;  %v339_v63 = vmul.u32 %v2709_v2, %v323_v43 }
  0xd1   :  { %vm341_vm1 = vc.u32 %v2733_v53, %v2727_v50  ;;  %v703_v39 = vand.u32 8388607, %v696_v56  ;;  %v708_v48 = vsel %vm707_vm0, %v706_v9, 0  ;;  %v596_v5 = vand.u32 2139095040, %v2752_v47 }
  0xd2   :  { %v563_v34 = vshll.u32 %v2707_v49, %v561_v55  ;;  %v564_v40 = vshrl.u32 %v546_v46, %v562_v59  ;;  %v567_v6 = vadd.s32 127, %v566_v61  ;;  %v343_v8 = vsel %vm341_vm1, %v342_v30, %v2728_v32 }
  0xd3   :  { %2297 = vcosq.f32 %v2745_v44  ;;  %v2770_v11 = vadd.s32 3, %v2705_v1  ;;  %v344_v2 = vadd.s32 %v343_v8, %v339_v63  ;;  %v710_v4 = vand.u32 31, %v708_v48 }
  0xd4   :  { %v2775_v27 = vsel %vm2673_vm8, %v2485_v26, %v266_v31  ;;  %v565_v37 = vor.u32 %v564_v40, %v563_v34  ;;  %v568_v19 = vshll.u32 %v567_v6, 23  ;;  %v2779_v49 = vsel %vm2721_vm14, 0, %v577_v21 }
  0xd5   :  { %v345_v13 = vadd.s32 536870912, %v344_v2  ;;  %v704_v15 = vor.u32 8388608, %v703_v39  ;;  %v711_v16 = vsub.s32 32, %v710_v4  ;;  %v597_v12 = vshrl.u32 %v596_v5, 23 }
  0xd6   :  { %v569_v18 = vor.u32 4788187, %v568_v19  ;;  %vm286_vm2 = vcmp.lt.s32.totalorder %v2579_v57, 0  ;;  %v2782_v1 = vshrl.u32 %v708_v48, 5  ;;  %v713_v20 = vshll.u32 %v2370_v54, %v710_v4 }
  0xd7   :  { %v716_v38 = vshll.u32 %v2371_v58, %v710_v4  ;;  %v572_v22 = vcvt.s32.f32 %v565_v37  ;;  %v346_v29 = vshrl.u32 %v345_v13, 30  ;;  %v714_v23 = vshrl.u32 %v2371_v58, %v711_v16 }
  0xd8   :  { %v717_v24 = vshrl.u32 %v2372_v60, %v711_v16  ;;  %v570_v28 = vand.u32 2147483647, %v569_v18  ;;  %v720_v17 = vshrl.u32 %v2373_v62, %v711_v16  ;;  %v722_v32 = vshll.u32 %v2373_v62, %v710_v4 }
  0xd9   :  { %v723_v33 = vshrl.u32 %v2374_v0, %v711_v16  ;;  %v347_v36 = vshll.u32 %v346_v29, 30  ;;  %v715_v51 = vor.u32 %v714_v23, %v713_v20  ;;  %v719_v41 = vshll.u32 %v2372_v60, %v710_v4 }
  0xda   :  { %v725_v43 = vshll.u32 %v2374_v0, %v710_v4  ;;  %v573_v9 = vmul.f32 %v572_v22, %v570_v28  ;;  %vm2795_vm3 = vcmp.le.f32.partialorder %v284_v3, 0.7853982  ;;  %v718_v55 = vor.u32 %v717_v24, %v716_v38 }
  0xdb   :  { %v724_v21 = vor.u32 %v723_v33, %v722_v32  ;;  %v726_v30 = vshrl.u32 %v3686_v7, %v711_v16  ;;  %2299 = vsinq.f32 %v2775_v27  ;;  %v2801_v31 = vsub.s32 %v344_v2, %v347_v36 }
  0xdc   :  { %v370_v59 = vsub.s32 4, %v346_v29  ;;  %v721_v61 = vor.u32 %v720_v17, %v719_v41  ;;  %v744_v39 = vshll.u32 %v704_v15, 8  ;;  %v593_v48 = vand.u32 2147483647, %v2752_v47 }
  0xdd   :  { %v727_v63 = vor.u32 %v726_v30, %v725_v43  ;;  %v2184_v5 = vadd.s32 4294967169, %v597_v12  ;;  %v2804_v34 = vpop.eup %2297  ;;  %v574_v3 = vxor.u32 2147483648, %v573_v9  ;;  %v350_v40 = vsub.s32 0, %v2801_v31 }
  0xde   :  { %vm728_vm4 = vcmp.lt.s32.totalorder %v2782_v1, 1  ;;  %vm731_vm5 = vcmp.lt.s32.totalorder %v2782_v1, 4  ;;  %v712_v6 = vshrl.u32 %v2370_v54, %v711_v16  ;;  %vm729_vm6 = vcmp.lt.s32.totalorder %v2782_v1, 2 }
  0xdf   :  { %v736_v8 = vsel %vm728_vm4, %v715_v51, %v718_v55  ;;  %v737_v2 = vsel %vm731_vm5, %v724_v21, 920167782  ;;  %v2173_v4 = vmin.u32 %v350_v40, %v2801_v31  ;;  %v371_v37 = vsel %vm286_vm2, %v370_v59, %v346_v29 }
  0xe0   :  { %vm730_vm7 = vcmp.lt.s32.totalorder %v2782_v1, 3  ;;  %v733_v19 = vsel %vm731_vm5, %v721_v61, 2102212464  ;;  %v732_v13 = vsel %vm728_vm4, %v712_v6, %v715_v51  ;;  %v740_v12 = vsel %vm728_vm4, %v718_v55, %v721_v61 }
  0xe1   :  { %v738_v15 = vsel %vm730_vm7, %v721_v61, %v737_v2  ;;  %v741_v18 = vsel %vm731_vm5, %v727_v63, 1326507024  ;;  %v575_v20 = vsel %vm492_vm9, %v574_v3, %v573_v9  ;;  %v352_v16 = vclz %v2173_v4 }
  0xe2   :  { %v739_v38 = vsel %vm729_vm6, %v736_v8, %v738_v15  ;;  %v742_v22 = vsel %vm730_vm7, %v724_v21, %v741_v18  ;;  %v734_v23 = vsel %vm730_vm7, %v718_v55, %v733_v19  ;;  %v373_v32 = vsel %vm2795_vm3, 0, %v371_v37 }
  0xe3   :  { %v743_v24 = vsel %vm729_vm6, %v740_v12, %v742_v22  ;;  %v2821_v29 = vmul.u32.u64.low %v744_v39, %v739_v38  ;;  %v2822_v28 = vmul.u32.u64.high %v744_v39, %v739_v38, %v2821_v29  ;;  %v2174_v17 = vadd.s32 4294967294, %v352_v16 }
  0xe4   :  { %v2827_v33 = vmul.u32.u64.low %v744_v39, %v743_v24  ;;  %v2828_v36 = vmul.u32.u64.high %v744_v39, %v743_v24, %v2827_v33  ;;  %2301 = vcosq.f32 %v2775_v27  ;;  %v2832_v51 = vand.u32 3, %v2770_v11 }
  0xe5   :  { %v2835_v41 = vadd.s32 3, %v2779_v49  ;;  %v603_v43 = vadd.s32 1, %v2184_v5  ;;  %v2837_v9 = vpop.eup %2299  ;;  %v578_v55 = vsel %vm2721_vm14, %v2495_v35, %v575_v20  ;;  %v340_v21 = vadd.s32 %v2727_v50, %v2733_v53 }
  0xe6   :  { %vm2175_vm8 = vcmp.lt.s32.totalorder %v2174_v17, 0  ;;  %v735_v27 = vsel %vm729_vm6, %v732_v13, %v734_v23  ;;  %v996_v11 = vadd.s32 3, %v373_v32  ;;  %v754_v59 = vadd.s32 1, %v2822_v28 }
  0xe7   :  { %v355_v30 = vsel %vm2175_vm8, 0, %v2174_v17  ;;  %vm604_vm9 = vcmp.gt.s32.totalorder %v603_v43, 0  ;;  %v2847_v5 = vand.u32 3, %v373_v32  ;;  %v600_v14 = vand.u32 8388607, %v593_v48 }
  0xe8   :  { %v356_v61 = vsub.s32 32, %v355_v30  ;;  %v360_v63 = vsub.s32 4294967266, %v355_v30  ;;  %2303 = vcosq.f32 %v578_v55  ;;  %v751_v3 = vmul.u32 %v744_v39, %v735_v27 }
  0xe9   :  { %vm753_vm10 = vc.u32 %v2828_v36, %v2821_v29  ;;  %v605_v50 = vsel %vm604_vm9, %v603_v43, 0  ;;  %v357_v53 = vshll.u32 %v2801_v31, %v355_v30  ;;  %2305 = vsinq.f32 %v578_v55 }
  0xea   :  { %v358_v1 = vshrl.u32 %v340_v21, %v356_v61  ;;  %v361_v40 = vadd.s32 127, %v360_v63  ;;  %v755_v6 = vsel %vm753_vm10, %v754_v59, %v2822_v28  ;;  %v2855_v8 = vand.u32 3, %v996_v11 }
  0xeb   :  { %v756_v2 = vadd.s32 %v755_v6, %v751_v3  ;;  %v607_v4 = vand.u32 31, %v605_v50  ;;  %v601_v13 = vor.u32 8388608, %v600_v14  ;;  %vm276_vm11 = vcmp.eq.s32.totalorder %v2748_v45, 0 }
  0xec   :  { %v359_v37 = vor.u32 %v358_v1, %v357_v53  ;;  %v362_v19 = vshll.u32 %v361_v40, 23  ;;  %v2858_v15 = vshrl.u32 %v605_v50, 5  ;;  %v277_v31 = vxor.u32 2147483648, %v2837_v9 }
  0xed   :  { %v757_v39 = vadd.s32 536870912, %v756_v2  ;;  %v608_v12 = vsub.s32 32, %v607_v4  ;;  %v610_v16 = vshll.u32 %v2370_v54, %v607_v4  ;;  %v613_v38 = vshll.u32 %v2371_v58, %v607_v4 }
  0xee   :  { %v363_v18 = vor.u32 4788187, %v362_v19  ;;  %v366_v20 = vcvt.s32.f32 %v359_v37  ;;  %v2863_v22 = vpop.eup %2301  ;;  %v616_v17 = vshll.u32 %v2372_v60, %v607_v4  ;;  %v619_v43 = vshll.u32 %v2373_v62, %v607_v4 }
  0xef   :  { %v2865_v23 = vshrl.u32 %v757_v39, 30  ;;  %v611_v24 = vshrl.u32 %v2371_v58, %v608_v12  ;;  %v614_v28 = vshrl.u32 %v2372_v60, %v608_v12  ;;  %v617_v33 = vshrl.u32 %v2373_v62, %v608_v12 }
  0xf0   :  { %v364_v32 = vand.u32 2147483647, %v363_v18  ;;  %v620_v55 = vshrl.u32 %v2374_v0, %v608_v12  ;;  %v622_v11 = vshll.u32 %v2374_v0, %v607_v4  ;;  %v623_v14 = vshrl.u32 %v3686_v7, %v608_v12 }
  0xf1   :  { %v759_v21 = vshll.u32 %v2865_v23, 30  ;;  %v612_v27 = vor.u32 %v611_v24, %v610_v16  ;;  %v615_v30 = vor.u32 %v614_v28, %v613_v38  ;;  %v618_v61 = vor.u32 %v617_v33, %v616_v17 }
  0xf2   :  { %v367_v59 = vmul.f32 %v366_v20, %v364_v32  ;;  %v621_v63 = vor.u32 %v620_v55, %v619_v43  ;;  %v2876_v3 = vpop.eup %2303  ;;  %v2880_v50 = vadd.s32 %v2821_v29, %v2828_v36  ;;  %v2884_v1 = vshll.u32 %v601_v13, 8 }
  0xf3   :  { %v2882_v53 = vsub.s32 %v756_v2, %v759_v21  ;;  %v278_v40 = vsel %vm276_vm11, %v2863_v22, %v277_v31  ;;  %v624_v4 = vor.u32 %v623_v14, %v622_v11  ;;  %vm625_vm12 = vcmp.lt.s32.totalorder %v2858_v15, 1  ;;  %v2894_v29 = vpop.eup %2305 }
  0xf4   :  { %v368_v6 = vxor.u32 2147483648, %v367_v59  ;;  %vm628_vm13 = vcmp.lt.s32.totalorder %v2858_v15, 4  ;;  %vm279_vm14 = vcmp.eq.s32.totalorder %v2748_v45, 2  ;;  %v609_v2 = vshrl.u32 %v2370_v54, %v608_v12 }
  0xf5   :  { %v762_v36 = vsub.s32 0, %v2882_v53  ;;  %vm626_vm15 = vcmp.lt.s32.totalorder %v2858_v15, 2  ;;  %v630_v37 = vsel %vm628_vm13, %v618_v61, 2102212464  ;;  %vm275_vm0 = vcmp.lt.s32.totalorder %v2748_v45, 2 }
  0xf6   :  { %v369_v19 = vsel %vm286_vm2, %v368_v6, %v367_v59  ;;  %vm698_vm1 = vcmp.lt.s32.totalorder %v2666_v10, 0  ;;  %vm627_vm4 = vcmp.lt.s32.totalorder %v2858_v15, 3  ;;  %v633_v13 = vsel %vm625_vm12, %v612_v27, %v615_v30 }
  0xf7   :  { %v634_v39 = vsel %vm628_vm13, %v621_v63, 920167782  ;;  %v372_v12 = vsel %vm2795_vm3, %v2579_v57, %v369_v19  ;;  %v2189_v18 = vmin.u32 %v762_v36, %v2882_v53  ;;  %v629_v20 = vsel %vm625_vm12, %v609_v2, %v612_v27 }
  0xf8   :  { %v631_v16 = vsel %vm627_vm4, %v615_v30, %v630_v37  ;;  %vm273_vm2 = vweird.f32 %v2485_v26  ;;  %2307 = vcosq.f32 %v372_v12  ;;  %v635_v38 = vsel %vm627_vm4, %v618_v61, %v634_v39 }
  0xf9   :  { %v637_v24 = vsel %vm625_vm12, %v615_v30, %v618_v61  ;;  %v638_v28 = vsel %vm628_vm13, %v624_v4, 1326507024  ;;  %2309 = vsinq.f32 %v372_v12  ;;  %v764_v17 = vclz %v2189_v18 }
  0xfa   :  { %v636_v46 = vsel %vm626_vm15, %v633_v13, %v635_v38  ;;  %v639_v32 = vsel %vm627_vm4, %v621_v63, %v638_v28  ;;  %v782_v33 = vsub.s32 4, %v2865_v23  ;;  %v280_v59 = vxor.u32 2147483648, %v2863_v22 }
  0xfb   :  { %v640_v43 = vsel %vm626_vm15, %v637_v24, %v639_v32  ;;  %v2927_v55 = vmul.u32.u64.low %v2884_v1, %v636_v46  ;;  %v2928_v21 = vmul.u32.u64.high %v2884_v1, %v636_v46, %v2927_v55  ;;  %v2190_v27 = vadd.s32 4294967294, %v764_v17 }
  0xfc   :  { %v2932_v30 = vmul.u32.u64.low %v2884_v1, %v640_v43  ;;  %v2933_v11 = vmul.u32.u64.high %v2884_v1, %v640_v43, %v2932_v30  ;;  %vm2938_vm3 = vcmp.le.f32.partialorder %v696_v56, 0.7853982  ;;  %v632_v63 = vsel %vm626_vm15, %v629_v20, %v631_v16 }
  0xfd   :  { %vm894_vm5 = vcmp.lt.s32.totalorder %v2832_v51, 2  ;;  %vm895_vm6 = vcmp.eq.s32.totalorder %v2832_v51, 0  ;;  %vm898_vm7 = vcmp.eq.s32.totalorder %v2832_v51, 2  ;;  %vm2191_vm8 = vcmp.lt.s32.totalorder %v2190_v27, 0  ;;  %v2960_v51 = vld [vmem:[%s3682_s5] ss:$0 sm:$0xff] }
  0xfe   :  { %vm379_vm9 = vcmp.eq.s32.totalorder %v2847_v5, 0  ;;  %vm382_vm10 = vcmp.eq.s32.totalorder %v2847_v5, 2  ;;  %v281_v56 = vsel %vm279_vm14, %v280_v59, %v2837_v9  ;;  %v897_v15 = vsel %vm895_vm6, %v2863_v22, %v277_v31  ;;  %v2971_v22 = vld [vmem:[%s3683_s4] ss:$0 sm:$0xff] }
  0xff   :  { %v900_v14 = vsel %vm898_vm7, %v280_v59, %v2837_v9  ;;  %v767_v6 = vsel %vm2191_vm8, 0, %v2190_v27  ;;  %v651_v4 = vadd.s32 1, %v2928_v21  ;;  %v282_v36 = vsel %vm275_vm0, %v278_v40, %v281_v56 }
 0x100   :  { %v901_v2 = vsel %vm894_vm5, %v897_v15, %v900_v14  ;;  %v768_v37 = vsub.s32 32, %v767_v6  ;;  %v772_v19 = vsub.s32 4294967266, %v767_v6  ;;  %v783_v31 = vsel %vm698_vm1, %v782_v33, %v2865_v23 }
 0x101   :  { %v648_v9 = vmul.u32 %v2884_v1, %v632_v63  ;;  %v769_v13 = vshll.u32 %v2882_v53, %v767_v6  ;;  %vm650_vm11 = vc.u32 %v2933_v11, %v2927_v55  ;;  %v283_v45 = vsel %vm273_vm2, nan, %v282_v36 }
 0x102   :  { %v902_v40 = vsel %vm273_vm2, nan, %v901_v2  ;;  %v770_v23 = vshrl.u32 %v2880_v50, %v768_v37  ;;  %v773_v39 = vadd.s32 127, %v772_v19  ;;  %v652_v1 = vsel %vm650_vm11, %v651_v4, %v2928_v21  ;;  %v2308_v18 = vpop.eup %2307 }
 0x103   :  { %v1423_v12 = vmul.f32 %v2960_v51, %v283_v45  ;;  %v653_v20 = vadd.s32 %v652_v1, %v648_v9  ;;  %v1429_v53 = vmul.f32 %v2971_v22, %v902_v40  ;;  %v1441_v16 = vmul.f32 %v2971_v22, %v283_v45  ;;  %v2310_v24 = vpop.eup %2309 }
 0x104   :  { %v1447_v38 = vmul.f32 %v2960_v51, %v902_v40  ;;  %v771_v28 = vor.u32 %v770_v23, %v769_v13  ;;  %v774_v17 = vshll.u32 %v773_v39, 23  ;;  %v383_v26 = vxor.u32 2147483648, %v2308_v18 }
 0x105   :  { %vm999_vm12 = vcmp.eq.s32.totalorder %v2855_v8, 0  ;;  %v654_v50 = vadd.s32 536870912, %v653_v20  ;;  %v380_v46 = vxor.u32 2147483648, %v2310_v24  ;;  %v2987_v32 = vadd.f32 %v1429_v53, %v1423_v12 }
 0x106   :  { %v1453_v33 = vsub.f32 %v1441_v16, %v1447_v38  ;;  %v775_v43 = vor.u32 4788187, %v774_v17  ;;  %v778_v21 = vcvt.s32.f32 %v771_v28  ;;  %v785_v27 = vsel %vm2938_vm3, 0, %v783_v31 }
 0x107   :  { %vm1002_vm13 = vcmp.eq.s32.totalorder %v2855_v8, 2  ;;  %v655_v30 = vshrl.u32 %v654_v50, 30  ;;  %v381_v59 = vsel %vm379_vm9, %v2308_v18, %v380_v46  ;;  %v384_v63 = vsel %vm382_vm10, %v383_v26, %v2310_v24 }
 0x108   :  { %v1477_v56 = vmul.f32 %v2987_v32, %v2987_v32  ;;  %v776_v15 = vand.u32 2147483647, %v775_v43  ;;  %v1001_v14 = vsel %vm999_vm12, %v2308_v18, %v380_v46  ;;  %v1004_v6 = vsel %vm1002_vm13, %v383_v26, %v2310_v24 }
 0x109   :  { %v1483_v4 = vmul.f32 %v1453_v33, %v1453_v33  ;;  %2311 = vsinq.f32 %v2745_v44  ;;  %v3000_v36 = vand.u32 3, %v2739_v52  ;;  %v656_v2 = vshll.u32 %v655_v30, 30 }
 0x10a   :  { %vm378_vm14 = vcmp.lt.s32.totalorder %v2847_v5, 2  ;;  %v779_v37 = vmul.f32 %v778_v21, %v776_v15  ;;  %v1412_v19 = vadd.s32 3, %v785_v27  ;;  %vm998_vm15 = vcmp.lt.s32.totalorder %v2855_v8, 2  ;;  %v3052_v15 = vpop.permute.xlu1 %72 }
 0x10b   :  { %v385_v31 = vsel %vm378_vm14, %v381_v59, %v384_v63  ;;  %v583_v9 = vand.u32 3, %v2779_v49  ;;  %v3005_v13 = vsub.s32 %v653_v20, %v656_v2  ;;  %v1005_v45 = vsel %vm998_vm15, %v1001_v14, %v1004_v6 }
 0x10c   :  { %v3007_v40 = vadd.f32 %v1483_v4, %v1477_v56  ;;  %v1205_v44 = vand.u32 3, %v2835_v41  ;;  %v780_v23 = vxor.u32 2147483648, %v779_v37  ;;  %vm595_vm0 = vcmp.lt.s32.totalorder %v2752_v47, 0 }
 0x10d   :  { %vm376_vm4 = vweird.f32 %v2579_v57  ;;  %v3012_v52 = vand.u32 3, %v785_v27  ;;  %v659_v5 = vsub.s32 0, %v3005_v13  ;;  %v679_v39 = vsub.s32 4, %v655_v30 }
 0x10e   :  { %v3015_v8 = vsel %vm376_vm4, nan, %v385_v31  ;;  %v781_v49 = vsel %vm698_vm1, %v780_v23, %v779_v37  ;;  %v3019_v1 = vand.u32 3, %v1412_v19  ;;  %v3021_v12 = vsel %vm376_vm4, nan, %v1005_v45 }
 0x10f   :  { %vm582_vm2 = vweird.f32 %v2495_v35  ;;  %v784_v57 = vsel %vm2938_vm3, %v2666_v10, %v781_v49  ;;  %v649_v41 = vadd.s32 %v2927_v55, %v2933_v11  ;;  %v2185_v18 = vmin.u32 %v659_v5, %v3005_v13 }
 0x110   :  { %vm584_vm5 = vcmp.lt.s32.totalorder %v583_v9, 2  ;;  %v1424_v20 = vmul.f32 %v2960_v51, %v3015_v8  ;;  %vm585_vm1 = vcmp.eq.s32.totalorder %v583_v9, 0  ;;  %v586_v53 = vxor.u32 2147483648, %v2894_v29 }
 0x111   :  { %v589_v16 = vxor.u32 2147483648, %v2876_v3  ;;  %v661_v38 = vclz %v2185_v18  ;;  %v3036_v24 = vsel %vm595_vm0, %v679_v39, %v655_v30  ;;  %v1430_v61 = vmul.f32 %v2971_v22, %v3021_v12 }
 0x112   :  { %vm588_vm3 = vcmp.eq.s32.totalorder %v583_v9, 2  ;;  %2313 = vsinq.f32 %v784_v57  ;;  %v587_v55 = vsel %vm585_vm1, %v2876_v3, %v586_v53  ;;  %vm1207_vm6 = vcmp.eq.s32.totalorder %v1205_v44, 0 }
 0x113   :  { %v590_v11 = vsel %vm588_vm3, %v589_v16, %v2894_v29  ;;  %v2312_v28 = vpop.eup %2311  ;;  %v2186_v17 = vadd.s32 4294967294, %v661_v38  ;;  %v1209_v50 = vsel %vm1207_vm6, %v2876_v3, %v586_v53  ;;  %vm1210_vm7 = vcmp.eq.s32.totalorder %v1205_v44, 2  ;;  %v3077_v53 = vpop.permute.xlu1 %82 }
 0x114   :  { %v591_v26 = vsel %vm584_vm5, %v587_v55, %v590_v11  ;;  %2315 = vcosq.f32 %v784_v57  ;;  %vm1206_vm8 = vcmp.lt.s32.totalorder %v1205_v44, 2  ;;  %v1212_v33 = vsel %vm1210_vm7, %v589_v16, %v2894_v29  ;;  %v68_v29 = vpop.permute.xlu0 %67 }
 0x115   :  { %v592_v46 = vsel %vm582_vm2, nan, %v591_v26  ;;  %vm479_vm9 = vweird.f32 %v2483_v25  ;;  %vm2187_vm10 = vcmp.lt.s32.totalorder %v2186_v17, 0  ;;  %v1213_v43 = vsel %vm1206_vm8, %v1209_v50, %v1212_v33 }
 0x116   :  { %v1426_v21 = vmul.f32 %v2960_v51, %v592_v46  ;;  %vm482_vm11 = vcmp.eq.s32.totalorder %v2736_v42, 0  ;;  %v664_v27 = vsel %vm2187_vm10, 0, %v2186_v17  ;;  %v1214_v3 = vsel %vm582_vm2, nan, %v1213_v43 }
 0x117   :  { %v1444_v30 = vmul.f32 %v2971_v22, %v592_v46  ;;  %v483_v59 = vxor.u32 2147483648, %v2312_v28  ;;  %v665_v63 = vsub.s32 32, %v664_v27  ;;  %v669_v56 = vsub.s32 4294967266, %v664_v27 }
 0x118   :  { %v1432_v14 = vmul.f32 %v2971_v22, %v1214_v3  ;;  %vm485_vm12 = vcmp.eq.s32.totalorder %v2736_v42, 2  ;;  %v666_v6 = vshll.u32 %v3005_v13, %v664_v27  ;;  %v1450_v4 = vmul.f32 %v2960_v51, %v1214_v3  ;;  %v3081_v55 = vpop.permute.xlu0 %77 }
 0x119   :  { %v484_v2 = vsel %vm482_vm11, %v2804_v34, %v483_v59  ;;  %v486_v35 = vxor.u32 2147483648, %v2804_v34  ;;  %v667_v37 = vshrl.u32 %v649_v41, %v665_v63  ;;  %v670_v19 = vadd.s32 127, %v669_v56  ;;  %v3102_v63 = vpop.permute.xlu1 %92 }
 0x11a   :  { %v3060_v31 = vadd.f32 %v1432_v14, %v1426_v21  ;;  %vm1103_vm13 = vcmp.eq.s32.totalorder %v3000_v36, 0  ;;  %v1456_v9 = vsub.f32 %v1444_v30, %v1450_v4  ;;  %vm481_vm14 = vcmp.lt.s32.totalorder %v2736_v42, 2 }
 0x11b   :  { %v487_v45 = vsel %vm485_vm12, %v486_v35, %v2312_v28  ;;  %v1105_v44 = vsel %vm1103_vm13, %v2804_v34, %v483_v59  ;;  %v668_v23 = vor.u32 %v667_v37, %v666_v6  ;;  %v671_v13 = vshll.u32 %v670_v19, 23 }
 0x11c   :  { %v1480_v5 = vmul.f32 %v3060_v31, %v3060_v31  ;;  %vm1106_vm15 = vcmp.eq.s32.totalorder %v3000_v36, 2  ;;  %v2314_v39 = vpop.eup %2313  ;;  %v1486_v49 = vmul.f32 %v1456_v9, %v1456_v9  ;;  %v488_v57 = vsel %vm481_vm14, %v484_v2, %v487_v45  ;;  %v3104_v56 = vpop.permute.xlu0 %87 }
 0x11d   :  { %vm1102_vm4 = vcmp.lt.s32.totalorder %v3000_v36, 2  ;;  %v1108_v41 = vsel %vm1106_vm15, %v486_v35, %v2312_v28  ;;  %vm3071_vm2 = vcmp.le.f32.partialorder %v593_v48, 0.7853982  ;;  %v672_v34 = vor.u32 4788187, %v671_v13 }
 0x11e   :  { %v3075_v18 = vadd.f32 %v1430_v61, %v1424_v20  ;;  %v489_v16 = vsel %vm479_vm9, nan, %v488_v57  ;;  %v1109_v38 = vsel %vm1102_vm4, %v1105_v44, %v1108_v41  ;;  %v2316_v11 = vpop.eup %2315  ;;  %v3083_v36 = vadd.f32 %v1486_v49, %v1480_v5 }
 0x11f   :  { %v1110_v48 = vsel %vm479_vm9, nan, %v1109_v38  ;;  %v1425_v28 = vmul.f32 %v2960_v51, %v489_v16  ;;  %v1443_v17 = vmul.f32 %v2971_v22, %v489_v16  ;;  %v673_v20 = vand.u32 2147483647, %v672_v34 }
 0x120   :  { %v675_v61 = vcvt.s32.f32 %v668_v23  ;;  %v1431_v26 = vmul.f32 %v2971_v22, %v1110_v48  ;;  %v1449_v50 = vmul.f32 %v2960_v51, %v1110_v48  ;;  %v1519_v46 = vmul.f32 %v2987_v32, %v68_v29  ;;  %v140_v49 = vpop.permute.xlu0 %139 }
 0x121   :  { %vm788_vm5 = vweird.f32 %v2666_v10  ;;  %vm791_vm1 = vcmp.eq.s32.totalorder %v3012_v52, 0  ;;  %v792_v33 = vxor.u32 2147483648, %v2314_v39  ;;  %v795_v27 = vxor.u32 2147483648, %v2316_v11 }
 0x122   :  { %v676_v43 = vmul.f32 %v675_v61, %v673_v20  ;;  %v3094_v25 = vadd.f32 %v1431_v26, %v1425_v28  ;;  %v1455_v21 = vsub.f32 %v1443_v17, %v1449_v50  ;;  %vm790_vm3 = vcmp.lt.s32.totalorder %v3012_v52, 2 }
 0x123   :  { %v793_v3 = vsel %vm791_vm1, %v2316_v11, %v792_v33  ;;  %vm794_vm6 = vcmp.eq.s32.totalorder %v3012_v52, 2  ;;  %vm1415_vm7 = vcmp.eq.s32.totalorder %v3019_v1, 0  ;;  %vm1418_vm8 = vcmp.eq.s32.totalorder %v3019_v1, 2 }
 0x124   :  { %v677_v30 = vxor.u32 2147483648, %v676_v43  ;;  %v1479_v32 = vmul.f32 %v3094_v25, %v3094_v25  ;;  %v1485_v59 = vmul.f32 %v1455_v21, %v1455_v21  ;;  %v796_v29 = vsel %vm794_vm6, %v795_v27, %v2314_v39 }
 0x125   :  { %vm1414_vm9 = vcmp.lt.s32.totalorder %v3019_v1, 2  ;;  %v1417_v14 = vsel %vm1415_vm7, %v2316_v11, %v792_v33  ;;  %v1420_v6 = vsel %vm1418_vm8, %v795_v27, %v2314_v39  ;;  %v797_v35 = vsel %vm790_vm3, %v793_v3, %v796_v29  ;;  %v145_v39 = vpop.permute.xlu1 %144 }
 0x126   :  { %v678_v4 = vsel %vm595_vm0, %v677_v30, %v676_v43  ;;  %v3109_v2 = vadd.f32 %v1485_v59, %v1479_v32  ;;  %v1421_v37 = vsel %vm1414_vm9, %v1417_v14, %v1420_v6  ;;  %v1520_v9 = vmul.f32 %v3075_v18, %v3052_v15 }
 0x127   :  { %v681_v19 = vsel %vm3071_vm2, %v2752_v47, %v678_v4  ;;  %v798_v1 = vsel %vm788_vm5, nan, %v797_v35  ;;  %v1422_v45 = vsel %vm788_vm5, nan, %v1421_v37  ;;  %v682_v44 = vsel %vm3071_vm2, 0, %v3036_v24 }
 0x128   :  { %2317 = vcosq.f32 %v681_v19  ;;  %v1428_v52 = vmul.f32 %v2960_v51, %v798_v1  ;;  %v1434_v23 = vmul.f32 %v2971_v22, %v1422_v45  ;;  %v1446_v13 = vmul.f32 %v2971_v22, %v798_v1 }
 0x129   :  { %2319 = vsinq.f32 %v681_v19  ;;  %v1452_v15 = vmul.f32 %v2960_v51, %v1422_v45  ;;  %v1308_v10 = vadd.s32 3, %v682_v44  ;;  %v3131_v41 = vadd.f32 %v1520_v9, %v145_v39  ;;  %v155_v3 = vpop.permute.xlu1 %154 }
 0x12a   :  { %v3129_v5 = vadd.f32 %v1434_v23, %v1428_v52  ;;  %v3133_v42 = vadd.f32 %v1519_v46, %v140_v49  ;;  %v686_v11 = vand.u32 3, %v682_v44  ;;  %v1522_v20 = vmul.f32 %v3060_v31, %v3077_v53 }
 0x12b   :  { %v1458_v57 = vsub.f32 %v1446_v13, %v1452_v15  ;;  %v1634_v16 = vand.u32 2147483647, %v3131_v41  ;;  %v1637_v38 = vand.u32 2139095040, %v3131_v41  ;;  %v1309_v17 = vand.u32 3, %v1308_v10 }
 0x12c   :  { %v1482_v24 = vmul.f32 %v3129_v5, %v3129_v5  ;;  %v1531_v48 = vand.u32 2147483647, %v3133_v42  ;;  %v1534_v28 = vand.u32 2139095040, %v3133_v42  ;;  %vm685_vm0 = vweird.f32 %v2752_v47 }
 0x12d   :  { %v1488_v34 = vmul.f32 %v1458_v57, %v1458_v57  ;;  %v1638_v26 = vshrl.u32 %v1637_v38, 23  ;;  %v1641_v50 = vand.u32 8388607, %v1634_v16  ;;  %vm687_vm10 = vcmp.lt.s32.totalorder %v686_v11, 2 }
 0x12e   :  { %v1535_v46 = vshrl.u32 %v1534_v28, 23  ;;  %v1538_v33 = vand.u32 8388607, %v1531_v48  ;;  %vm688_vm11 = vcmp.eq.s32.totalorder %v686_v11, 0  ;;  %vm691_vm12 = vcmp.eq.s32.totalorder %v686_v11, 2 }
 0x12f   :  { %v3143_v61 = vadd.f32 %v1488_v34, %v1482_v24  ;;  %v2220_v43 = vadd.s32 4294967169, %v1638_v26  ;;  %vm1310_vm13 = vcmp.lt.s32.totalorder %v1309_v17, 2  ;;  %v3150_v32 = vadd.f32 %v1522_v20, %v155_v3 }
 0x130   :  { %v2216_v27 = vadd.s32 4294967169, %v1535_v46  ;;  %vm1314_vm14 = vcmp.eq.s32.totalorder %v1309_v17, 2  ;;  %v1642_v29 = vor.u32 8388608, %v1641_v50  ;;  %v1539_v14 = vor.u32 8388608, %v1538_v33 }
 0x131   :  { %v1644_v30 = vadd.s32 1, %v2220_v43  ;;  %vm1311_vm15 = vcmp.eq.s32.totalorder %v1309_v17, 0  ;;  %v1843_v52 = vand.u32 2139095040, %v3150_v32 }
 0x132   :  { %v2318_v21 = vpop.eup %2317  ;;  %v1541_v9 = vadd.s32 1, %v2216_v27  ;;  %v3160_v15 = vshll.u32 %v1642_v29, 8  ;;  %v3162_v39 = vshll.u32 %v1539_v14, 8 }
 0x133   :  { %v2320_v31 = vpop.eup %2319  ;;  %v692_v53 = vxor.u32 2147483648, %v2318_v21  ;;  %vm1645_vm4 = vcmp.gt.s32.totalorder %v1644_v30, 0 }
 0x134   :  { %v689_v59 = vxor.u32 2147483648, %v2320_v31  ;;  %v1646_v19 = vsel %vm1645_vm4, %v1644_v30, 0  ;;  %vm1542_vm2 = vcmp.gt.s32.totalorder %v1541_v9, 0 }
 0x135   :  { %v693_v6 = vsel %vm691_vm12, %v692_v53, %v2320_v31  ;;  %v1316_v4 = vsel %vm1314_vm14, %v692_v53, %v2320_v31  ;;  %v1648_v44 = vand.u32 31, %v1646_v19  ;;  %v1647_v34 = vshrl.u32 %v1646_v19, 5 }
 0x136   :  { %v690_v35 = vsel %vm688_vm11, %v2318_v21, %v689_v59  ;;  %v1313_v37 = vsel %vm1311_vm15, %v2318_v21, %v689_v59 }
 0x137   :  { %v694_v1 = vsel %vm687_vm10, %v690_v35, %v693_v6  ;;  %v1317_v45 = vsel %vm1310_vm13, %v1313_v37, %v1316_v4  ;;  %v1649_v38 = vsub.s32 32, %v1648_v44  ;;  %v1651_v11 = vshll.u32 %v2370_v54, %v1648_v44 }
 0x138   :  { %v695_v23 = vsel %vm685_vm0, nan, %v694_v1  ;;  %v1318_v13 = vsel %vm685_vm0, nan, %v1317_v45  ;;  %v1654_v17 = vshll.u32 %v2371_v58, %v1648_v44  ;;  %v1657_v20 = vshll.u32 %v2372_v60, %v1648_v44 }
 0x139   :  { %v1427_v49 = vmul.f32 %v2960_v51, %v695_v23  ;;  %v1433_v10 = vmul.f32 %v2971_v22, %v1318_v13  ;;  %v1445_v57 = vmul.f32 %v2971_v22, %v695_v23  ;;  %v1451_v24 = vmul.f32 %v2960_v51, %v1318_v13 }
 0x13a   :  { %v1652_v26 = vshrl.u32 %v2371_v58, %v1649_v38  ;;  %v1655_v50 = vshrl.u32 %v2372_v60, %v1649_v38  ;;  %v1658_v46 = vshrl.u32 %v2373_v62, %v1649_v38  ;;  %v1660_v33 = vshll.u32 %v2373_v62, %v1648_v44 }
 0x13b   :  { %v3169_v28 = vadd.f32 %v1433_v10, %v1427_v49  ;;  %v1457_v47 = vsub.f32 %v1445_v57, %v1451_v24  ;;  %v1661_v27 = vshrl.u32 %v2374_v0, %v1649_v38  ;;  %v1663_v3 = vshll.u32 %v2374_v0, %v1648_v44 }
 0x13c   :  { %v1653_v31 = vor.u32 %v1652_v26, %v1651_v11  ;;  %v1656_v53 = vor.u32 %v1655_v50, %v1654_v17  ;;  %v1659_v30 = vor.u32 %v1658_v46, %v1657_v20  ;;  %v1664_v59 = vshrl.u32 %v3686_v7, %v1649_v38 }
 0x13d   :  { %v1481_v43 = vmul.f32 %v3169_v28, %v3169_v28  ;;  %v1487_v21 = vmul.f32 %v1457_v47, %v1457_v47  ;;  %v1650_v14 = vshrl.u32 %v2370_v54, %v1649_v38  ;;  %v1662_v6 = vor.u32 %v1661_v27, %v1660_v33 }
 0x13e   :  { %v1543_v4 = vsel %vm1542_vm2, %v1541_v9, 0  ;;  %v1665_v35 = vor.u32 %v1664_v59, %v1663_v3  ;;  %vm1666_vm5 = vcmp.lt.s32.totalorder %v1647_v34, 1  ;;  %vm1668_vm1 = vcmp.lt.s32.totalorder %v1647_v34, 3 }
 0x13f   :  { %v3182_v29 = vadd.f32 %v1487_v21, %v1481_v43  ;;  %vm1669_vm3 = vcmp.lt.s32.totalorder %v1647_v34, 4  ;;  %v1674_v19 = vsel %vm1666_vm5, %v1653_v31, %v1656_v53  ;;  %v1678_v45 = vsel %vm1666_vm5, %v1656_v53, %v1659_v30 }
 0x140   :  { %v1671_v37 = vsel %vm1669_vm3, %v1659_v30, 2102212464  ;;  %v1675_v1 = vsel %vm1669_vm3, %v1662_v6, 920167782  ;;  %vm1667_vm6 = vcmp.lt.s32.totalorder %v1647_v34, 2  ;;  %v1670_v44 = vsel %vm1666_vm5, %v1650_v14, %v1653_v31 }
 0x141   :  { %v1676_v23 = vsel %vm1668_vm1, %v1659_v30, %v1675_v1  ;;  %v1679_v13 = vsel %vm1669_vm3, %v1665_v35, 1326507024  ;;  %v1672_v49 = vsel %vm1668_vm1, %v1656_v53, %v1671_v37  ;;  %v1545_v24 = vand.u32 31, %v1543_v4 }
 0x142   :  { %v1677_v10 = vsel %vm1667_vm6, %v1674_v19, %v1676_v23  ;;  %v1680_v57 = vsel %vm1668_vm1, %v1662_v6, %v1679_v13  ;;  %v1844_v47 = vshrl.u32 %v1843_v52, 23  ;;  %v1544_v26 = vshrl.u32 %v1543_v4, 5 }
 0x143   :  { %v1681_v38 = vsel %vm1667_vm6, %v1678_v45, %v1680_v57  ;;  %v3187_v11 = vmul.u32.u64.low %v3160_v15, %v1677_v10  ;;  %v3188_v9 = vmul.u32.u64.high %v3160_v15, %v1677_v10, %v3187_v11  ;;  %v1546_v34 = vsub.s32 32, %v1545_v24 }
 0x144   :  { %v3192_v17 = vmul.u32.u64.low %v3160_v15, %v1681_v38  ;;  %v3193_v20 = vmul.u32.u64.high %v3160_v15, %v1681_v38, %v3192_v17  ;;  %v1673_v50 = vsel %vm1667_vm6, %v1670_v44, %v1672_v49  ;;  %v1548_v46 = vshll.u32 %v2370_v54, %v1545_v24 }
 0x145   :  { %v1551_v33 = vshll.u32 %v2371_v58, %v1545_v24  ;;  %v1554_v43 = vshll.u32 %v2372_v60, %v1545_v24  ;;  %v1549_v21 = vshrl.u32 %v2371_v58, %v1546_v34  ;;  %v1552_v27 = vshrl.u32 %v2372_v60, %v1546_v34 }
 0x146   :  { %v1555_v3 = vshrl.u32 %v2373_v62, %v1546_v34  ;;  %v1557_v52 = vshll.u32 %v2373_v62, %v1545_v24  ;;  %v1692_v31 = vadd.s32 1, %v3188_v9  ;;  %v1558_v53 = vshrl.u32 %v2374_v0, %v1546_v34 }
 0x147   :  { %v1560_v30 = vshll.u32 %v2374_v0, %v1545_v24  ;;  %v1561_v59 = vshrl.u32 %v3686_v7, %v1546_v34  ;;  %v1689_v14 = vmul.u32 %v3160_v15, %v1673_v50  ;;  %vm1691_vm7 = vc.u32 %v3193_v20, %v3187_v11 }
 0x148   :  { %v1550_v6 = vor.u32 %v1549_v21, %v1548_v46  ;;  %v1553_v4 = vor.u32 %v1552_v27, %v1551_v33  ;;  %v1693_v35 = vsel %vm1691_vm7, %v1692_v31, %v3188_v9  ;;  %v1556_v37 = vor.u32 %v1555_v3, %v1554_v43 }
 0x149   :  { %v1559_v19 = vor.u32 %v1558_v53, %v1557_v52  ;;  %v1562_v1 = vor.u32 %v1561_v59, %v1560_v30  ;;  %v1694_v45 = vadd.s32 %v1693_v35, %v1689_v14  ;;  %vm1563_vm8 = vcmp.lt.s32.totalorder %v1544_v26, 1 }
 0x14a   :  { %vm1566_vm9 = vcmp.lt.s32.totalorder %v1544_v26, 4  ;;  %v2228_v44 = vadd.s32 4294967169, %v1844_v47  ;;  %vm1564_vm0 = vcmp.lt.s32.totalorder %v1544_v26, 2  ;;  %vm1565_vm10 = vcmp.lt.s32.totalorder %v1544_v26, 3 }
 0x14b   :  { %v1571_v23 = vsel %vm1563_vm8, %v1550_v6, %v1553_v4  ;;  %v1572_v13 = vsel %vm1566_vm9, %v1559_v19, 920167782  ;;  %v1695_v15 = vadd.s32 536870912, %v1694_v45  ;;  %v1568_v49 = vsel %vm1566_vm9, %v1556_v37, 2102212464 }
 0x14c   :  { %v1573_v10 = vsel %vm1565_vm10, %v1556_v37, %v1572_v13  ;;  %v1575_v57 = vsel %vm1563_vm8, %v1553_v4, %v1556_v37  ;;  %v1547_v24 = vshrl.u32 %v2370_v54, %v1546_v34  ;;  %v1576_v9 = vsel %vm1566_vm9, %v1562_v1, 1326507024 }
 0x14d   :  { %v1574_v38 = vsel %vm1564_vm0, %v1571_v23, %v1573_v10  ;;  %v3214_v17 = vshrl.u32 %v1695_v15, 30  ;;  %v1577_v50 = vsel %vm1565_vm10, %v1559_v19, %v1576_v9  ;;  %v1569_v43 = vsel %vm1565_vm10, %v1553_v4, %v1568_v49 }
 0x14e   :  { %v3217_v47 = vmul.u32.u64.low %v3162_v39, %v1574_v38  ;;  %v3218_v46 = vmul.u32.u64.high %v3162_v39, %v1574_v38, %v3217_v47  ;;  %v1567_v33 = vsel %vm1563_vm8, %v1547_v24, %v1550_v6  ;;  %v1578_v21 = vsel %vm1564_vm0, %v1575_v57, %v1577_v50 }
 0x14f   :  { %v1850_v27 = vadd.s32 1, %v2228_v44  ;;  %v1697_v3 = vshll.u32 %v3214_v17, 30  ;;  %v3225_v34 = vmul.u32.u64.low %v3162_v39, %v1578_v21  ;;  %v3226_v52 = vmul.u32.u64.high %v3162_v39, %v1578_v21, %v3225_v34  ;;  %v150_v44 = vpop.permute.xlu0 %149 }
 0x150   :  { %v1840_v31 = vand.u32 2147483647, %v3150_v32  ;;  %v1570_v30 = vsel %vm1564_vm0, %v1567_v33, %v1569_v43  ;;  %v1589_v59 = vadd.s32 1, %v3218_v46  ;;  %v1521_v6 = vmul.f32 %v3094_v25, %v3081_v55 }
 0x151   :  { %vm1851_vm11 = vcmp.gt.s32.totalorder %v1850_v27, 0  ;;  %v3229_v53 = vsub.s32 %v1694_v45, %v1697_v3  ;;  %vm1588_vm12 = vc.u32 %v3226_v52, %v3217_v47  ;;  %v1586_v37 = vmul.u32 %v3162_v39, %v1570_v30 }
 0x152   :  { %v1852_v14 = vsel %vm1851_vm11, %v1850_v27, 0  ;;  %v1590_v19 = vsel %vm1588_vm12, %v1589_v59, %v3218_v46  ;;  %v1847_v26 = vand.u32 8388607, %v1840_v31  ;;  %v1442_v55 = vmul.f32 %v2971_v22, %v3015_v8 }
 0x153   :  { %v1854_v4 = vand.u32 31, %v1852_v14  ;;  %v1700_v35 = vsub.s32 0, %v3229_v53  ;;  %v1448_v25 = vmul.f32 %v2960_v51, %v3021_v12  ;;  %v1591_v23 = vadd.s32 %v1590_v19, %v1586_v37 }
 0x154   :  { %v3247_v13 = vadd.f32 %v1521_v6, %v150_v44  ;;  %v1690_v39 = vadd.s32 %v3187_v11, %v3193_v20  ;;  %v1848_v24 = vor.u32 8388608, %v1847_v26  ;;  %v1853_v11 = vshrl.u32 %v1852_v14, 5 }
 0x155   :  { %v1855_v1 = vsub.s32 32, %v1854_v4  ;;  %v2221_v45 = vmin.u32 %v1700_v35, %v3229_v53  ;;  %v1592_v57 = vadd.s32 536870912, %v1591_v23  ;;  %v1857_v51 = vshll.u32 %v2370_v54, %v1854_v4 }
 0x156   :  { %v1863_v12 = vshll.u32 %v2372_v60, %v1854_v4  ;;  %v1860_v20 = vshll.u32 %v2371_v58, %v1854_v4  ;;  %v1866_v46 = vshll.u32 %v2373_v62, %v1854_v4  ;;  %v1869_v21 = vshll.u32 %v2374_v0, %v1854_v4 }
 0x157   :  { %v1702_v15 = vclz %v2221_v45  ;;  %v1858_v49 = vshrl.u32 %v2371_v58, %v1855_v1  ;;  %v1864_v10 = vshrl.u32 %v2373_v62, %v1855_v1  ;;  %v1861_v38 = vshrl.u32 %v2372_v60, %v1855_v1 }
 0x158   :  { %v1867_v22 = vshrl.u32 %v2374_v0, %v1855_v1  ;;  %v1870_v9 = vshrl.u32 %v3686_v7, %v1855_v1  ;;  %v3258_v50 = vshrl.u32 %v1592_v57, 30  ;;  %v1888_v37 = vshll.u32 %v1848_v24, 8 }
 0x159   :  { %v2222_v8 = vadd.s32 4294967294, %v1702_v15  ;;  %v1859_v33 = vor.u32 %v1858_v49, %v1857_v51  ;;  %v1865_v43 = vor.u32 %v1864_v10, %v1863_v12  ;;  %v1862_v34 = vor.u32 %v1861_v38, %v1860_v20 }
 0x15a   :  { %v1594_v3 = vshll.u32 %v3258_v50, 30  ;;  %v1868_v30 = vor.u32 %v1867_v22, %v1866_v46  ;;  %v1871_v35 = vor.u32 %v1870_v9, %v1869_v21  ;;  %v1856_v14 = vshrl.u32 %v2370_v54, %v1855_v1 }
 0x15b   :  { %vm2223_vm13 = vcmp.lt.s32.totalorder %v2222_v8, 0  ;;  %vm1875_vm14 = vcmp.lt.s32.totalorder %v1853_v11, 4  ;;  %v1740_v26 = vand.u32 2139095040, %v3247_v13  ;;  %vm1872_vm15 = vcmp.lt.s32.totalorder %v1853_v11, 1 }
 0x15c   :  { %v1705_v27 = vsel %vm2223_vm13, 0, %v2222_v8  ;;  %v3264_v19 = vsub.s32 %v1591_v23, %v1594_v3  ;;  %vm1874_vm4 = vcmp.lt.s32.totalorder %v1853_v11, 3  ;;  %v1877_v4 = vsel %vm1875_vm14, %v1865_v43, 2102212464 }
 0x15d   :  { %v1706_v59 = vsub.s32 32, %v1705_v27  ;;  %v1710_v6 = vsub.s32 4294967266, %v1705_v27  ;;  %v1880_v49 = vsel %vm1872_vm15, %v1859_v33, %v1862_v34  ;;  %v1881_v10 = vsel %vm1875_vm14, %v1868_v30, 920167782 }
 0x15e   :  { %v1597_v15 = vsub.s32 0, %v3264_v19  ;;  %v1882_v38 = vsel %vm1874_vm4, %v1865_v43, %v1881_v10  ;;  %v1884_v24 = vsel %vm1872_vm15, %v1862_v34, %v1865_v43  ;;  %v1885_v23 = vsel %vm1875_vm14, %v1871_v35, 1326507024 }
 0x15f   :  { %v1711_v45 = vadd.s32 127, %v1710_v6  ;;  %v1708_v44 = vshrl.u32 %v1690_v39, %v1706_v59  ;;  %v1707_v22 = vshll.u32 %v3229_v53, %v1705_v27  ;;  %vm1873_vm2 = vcmp.lt.s32.totalorder %v1853_v11, 2 }
 0x160   :  { %v2217_v1 = vmin.u32 %v1597_v15, %v3264_v19  ;;  %v1876_v8 = vsel %vm1872_vm15, %v1856_v14, %v1859_v33  ;;  %v1878_v12 = vsel %vm1874_vm4, %v1862_v34, %v1877_v4  ;;  %v1883_v9 = vsel %vm1873_vm2, %v1880_v49, %v1882_v38 }
 0x161   :  { %v1712_v57 = vshll.u32 %v1711_v45, 23  ;;  %v1886_v39 = vsel %vm1874_vm4, %v1868_v30, %v1885_v23  ;;  %v3274_v21 = vmul.u32.u64.low %v1888_v37, %v1883_v9  ;;  %v3275_v3 = vmul.u32.u64.high %v1888_v37, %v1883_v9, %v3274_v21 }
 0x162   :  { %v1599_v20 = vclz %v2217_v1  ;;  %v1887_v46 = vsel %vm1873_vm2, %v1884_v24, %v1886_v39  ;;  %v1709_v43 = vor.u32 %v1708_v44, %v1707_v22  ;;  %v1454_v53 = vsub.f32 %v1442_v55, %v1448_v25 }
 0x163   :  { %v1713_v51 = vor.u32 4788187, %v1712_v57  ;;  %v3278_v59 = vmul.u32.u64.low %v1888_v37, %v1887_v46  ;;  %v3279_v6 = vmul.u32.u64.high %v1888_v37, %v1887_v46, %v3278_v59  ;;  %v1879_v35 = vsel %vm1873_vm2, %v1876_v8, %v1878_v12 }
 0x164   :  { %v2218_v27 = vadd.s32 4294967294, %v1599_v20  ;;  %v1741_v33 = vshrl.u32 %v1740_v26, 23  ;;  %v1898_v34 = vadd.s32 1, %v3275_v3  ;;  %v1716_v30 = vcvt.s32.f32 %v1709_v43 }
 0x165   :  { %v1714_v14 = vand.u32 2147483647, %v1713_v51  ;;  %v1895_v4 = vmul.u32 %v1888_v37, %v1879_v35  ;;  %vm1897_vm1 = vc.u32 %v3279_v6, %v3274_v21  ;;  %v1478_v44 = vmul.f32 %v3075_v18, %v3075_v18 }
 0x166   :  { %vm2219_vm5 = vcmp.lt.s32.totalorder %v2218_v27, 0  ;;  %v2224_v11 = vadd.s32 4294967169, %v1741_v33  ;;  %v1484_v15 = vmul.f32 %v1454_v53, %v1454_v53  ;;  %v1899_v55 = vsel %vm1897_vm1, %v1898_v34, %v3275_v3 }
 0x167   :  { %v1602_v45 = vsel %vm2219_vm5, 0, %v2218_v27  ;;  %v1717_v25 = vmul.f32 %v1716_v30, %v1714_v14  ;;  %v1900_v26 = vadd.s32 %v1899_v55, %v1895_v4  ;;  %v1737_v37 = vand.u32 2147483647, %v3247_v13 }
 0x168   :  { %v1607_v49 = vsub.s32 4294967266, %v1602_v45  ;;  %v1747_v10 = vadd.s32 1, %v2224_v11  ;;  %v3287_v24 = vadd.f32 %v1484_v15, %v1478_v44  ;;  %v1603_v23 = vsub.s32 32, %v1602_v45 }
 0x169   :  { %v1901_v38 = vadd.s32 536870912, %v1900_v26  ;;  %v1718_v1 = vxor.u32 2147483648, %v1717_v25  ;;  %v1524_v51 = vmul.f32 %v3129_v5, %v3102_v63  ;;  %v1587_v12 = vadd.s32 %v3217_v47, %v3226_v52  ;;  %v165_v52 = vpop.permute.xlu1 %164 }
 0x16a   :  { %v1608_v57 = vadd.s32 127, %v1607_v49  ;;  %vm1748_vm3 = vcmp.gt.s32.totalorder %v1747_v10, 0  ;;  %vm1636_vm6 = vcmp.lt.s32.totalorder %v3131_v41, 0  ;;  %v1744_v59 = vand.u32 8388607, %v1737_v37 }
 0x16b   :  { %v1749_v22 = vsel %vm1748_vm3, %v1747_v10, 0  ;;  %v3290_v8 = vshrl.u32 %v1901_v38, 30  ;;  %v1605_v43 = vshrl.u32 %v1587_v12, %v1603_v23  ;;  %v1719_v5 = vsel %vm1636_vm6, %v1718_v1, %v1717_v25 }
 0x16c   :  { %v1751_v18 = vand.u32 31, %v1749_v22  ;;  %v1609_v9 = vshll.u32 %v1608_v57, 23  ;;  %vm3310_vm7 = vcmp.le.f32.partialorder %v1634_v16, 0.7853982  ;;  %v1604_v35 = vshll.u32 %v3264_v19, %v1602_v45 }
 0x16d   :  { %v1903_v20 = vshll.u32 %v3290_v8, 30  ;;  %v3315_v14 = vadd.f32 %v1524_v51, %v165_v52  ;;  %v1722_v16 = vsel %vm3310_vm7, %v3131_v41, %v1719_v5  ;;  %v1745_v15 = vor.u32 8388608, %v1744_v59 }
 0x16e   :  { %v1752_v46 = vsub.s32 32, %v1751_v18  ;;  %v1610_v33 = vor.u32 4788187, %v1609_v9  ;;  %v1606_v44 = vor.u32 %v1605_v43, %v1604_v35  ;;  %v1754_v45 = vshll.u32 %v2370_v54, %v1751_v18 }
 0x16f   :  { %v3306_v47 = vsub.s32 %v1900_v26, %v1903_v20  ;;  %v1757_v55 = vshll.u32 %v2371_v58, %v1751_v18  ;;  %v1763_v25 = vshll.u32 %v2373_v62, %v1751_v18  ;;  %v1750_v10 = vshrl.u32 %v1749_v22, 5 }
 0x170   :  { %v1755_v11 = vshrl.u32 %v2371_v58, %v1752_v46  ;;  %v1758_v30 = vshrl.u32 %v2372_v60, %v1752_v46  ;;  %v1764_v4 = vshrl.u32 %v2374_v0, %v1752_v46  ;;  %v1761_v49 = vshrl.u32 %v2373_v62, %v1752_v46 }
 0x171   :  { %v1906_v34 = vsub.s32 0, %v3306_v47  ;;  %v1611_v26 = vand.u32 2147483647, %v1610_v33  ;;  %v1760_v57 = vshll.u32 %v2372_v60, %v1751_v18  ;;  %v1767_v38 = vshrl.u32 %v3686_v7, %v1752_v46 }
 0x172   :  { %v1756_v1 = vor.u32 %v1755_v11, %v1754_v45  ;;  %v1759_v51 = vor.u32 %v1758_v30, %v1757_v55  ;;  %v1765_v12 = vor.u32 %v1764_v4, %v1763_v25  ;;  %v1720_v9 = vsub.s32 4, %v3214_v17 }
 0x173   :  { %v2229_v19 = vmin.u32 %v1906_v34, %v3306_v47  ;;  %v1613_v20 = vcvt.s32.f32 %v1606_v44  ;;  %v1762_v43 = vor.u32 %v1761_v49, %v1760_v57  ;;  %v1766_v59 = vshll.u32 %v2374_v0, %v1751_v18 }
 0x174   :  { %2321 = vcosq.f32 %v1722_v16  ;;  %v1785_v52 = vshll.u32 %v1745_v15, 8  ;;  %v2049_v35 = vand.u32 2139095040, %v3315_v14  ;;  %vm1533_vm8 = vcmp.lt.s32.totalorder %v3133_v42, 0 }
 0x175   :  { %v1908_v23 = vclz %v2229_v19  ;;  %v1614_v22 = vmul.f32 %v1613_v20, %v1611_v26  ;;  %v1768_v33 = vor.u32 %v1767_v38, %v1766_v59  ;;  %vm1769_vm9 = vcmp.lt.s32.totalorder %v1750_v10, 1 }
 0x176   :  { %vm1772_vm0 = vcmp.lt.s32.totalorder %v1750_v10, 4  ;;  %vm1771_vm11 = vcmp.lt.s32.totalorder %v1750_v10, 3  ;;  %v1777_v34 = vsel %vm1769_vm9, %v1756_v1, %v1759_v51  ;;  %2323 = vsinq.f32 %v1722_v16 }
 0x177   :  { %v2230_v5 = vadd.s32 4294967294, %v1908_v23  ;;  %v1778_v11 = vsel %vm1772_vm0, %v1765_v12, 920167782  ;;  %v1774_v18 = vsel %vm1772_vm0, %v1762_v43, 2102212464  ;;  %v1753_v49 = vshrl.u32 %v2370_v54, %v1752_v46 }
 0x178   :  { %v1779_v4 = vsel %vm1771_vm11, %v1762_v43, %v1778_v11  ;;  %vm3343_vm12 = vcmp.le.f32.partialorder %v1531_v48, 0.7853982  ;;  %vm1770_vm13 = vcmp.lt.s32.totalorder %v1750_v10, 2  ;;  %v1781_v19 = vsel %vm1769_vm9, %v1759_v51, %v1762_v43 }
 0x179   :  { %vm2231_vm10 = vcmp.lt.s32.totalorder %v2230_v5, 0  ;;  %v1615_v16 = vxor.u32 2147483648, %v1614_v22  ;;  %v1780_v45 = vsel %vm1770_vm13, %v1777_v34, %v1779_v4  ;;  %v1782_v55 = vsel %vm1772_vm0, %v1768_v33, 1326507024 }
 0x17a   :  { %v3337_v30 = vsel %vm2231_vm10, 0, %v2230_v5  ;;  %v2050_v25 = vshrl.u32 %v2049_v35, 23  ;;  %v1773_v57 = vsel %vm1769_vm9, %v1753_v49, %v1756_v1  ;;  %v1775_v48 = vsel %vm1771_vm11, %v1759_v51, %v1774_v18 }
 0x17b   :  { %v1916_v15 = vsub.s32 4294967266, %v3337_v30  ;;  %v1783_v38 = vsel %vm1771_vm11, %v1765_v12, %v1782_v55  ;;  %v3356_v20 = vmul.u32.u64.low %v1785_v52, %v1780_v45  ;;  %v3357_v46 = vmul.u32.u64.high %v1785_v52, %v1780_v45, %v3356_v20  ;;  %v160_v45 = vpop.permute.xlu0 %159 }
 0x17c   :  { %v1784_v23 = vsel %vm1770_vm13, %v1781_v19, %v1783_v38  ;;  %v2236_v43 = vadd.s32 4294967169, %v2050_v25  ;;  %v1721_v59 = vsel %vm1636_vm6, %v1720_v9, %v3214_v17  ;;  %v1617_v5 = vsub.s32 4, %v3258_v50 }
 0x17d   :  { %v1917_v26 = vadd.s32 127, %v1916_v15  ;;  %v3364_v35 = vmul.u32.u64.low %v1785_v52, %v1784_v23  ;;  %v3365_v33 = vmul.u32.u64.high %v1785_v52, %v1784_v23, %v3364_v35  ;;  %vm1842_vm14 = vcmp.lt.s32.totalorder %v3150_v32, 0 }
 0x17e   :  { %v1776_v1 = vsel %vm1770_vm13, %v1773_v57, %v1775_v48  ;;  %v3685_v51 = vand.u32 2147483647, %v3315_v14  ;;  %v2056_v12 = vadd.s32 1, %v2236_v43  ;;  %v3370_v34 = vpop.eup %2321  ;;  %v1523_v11 = vmul.f32 %v3169_v28, %v3104_v56 }
 0x17f   :  { %v1616_v17 = vsel %vm1533_vm8, %v1615_v16, %v1614_v22  ;;  %v1912_v9 = vsub.s32 32, %v3337_v30  ;;  %v1918_v18 = vshll.u32 %v1917_v26, 23  ;;  %v1723_v4 = vsel %vm3310_vm7, 0, %v1721_v59 }
 0x180   :  { %v1926_v10 = vsub.s32 4, %v3290_v8  ;;  %v1795_v15 = vadd.s32 1, %v3357_v46  ;;  %vm2057_vm15 = vcmp.gt.s32.totalorder %v2056_v12, 0  ;;  %v3384_v49 = vsel %vm1533_vm8, %v1617_v5, %v3258_v50  ;;  %v3390_v22 = vpop.eup %2323 }
 0x181   :  { %v1896_v56 = vadd.s32 %v3274_v21, %v3279_v6  ;;  %v1792_v28 = vmul.u32 %v1785_v52, %v1776_v1  ;;  %vm1794_vm4 = vc.u32 %v3365_v33, %v3356_v20  ;;  %v1619_v27 = vsel %vm3343_vm12, %v3133_v42, %v1616_v17 }
 0x182   :  { %v1796_v19 = vsel %vm1794_vm4, %v1795_v15, %v3357_v46  ;;  %v2053_v16 = vand.u32 8388607, %v3685_v51  ;;  %v2058_v50 = vsel %vm2057_vm15, %v2056_v12, 0  ;;  %v1919_v25 = vor.u32 4788187, %v1918_v18 }
 0x183   :  { %v1914_v55 = vshrl.u32 %v1896_v56, %v1912_v9  ;;  %v1797_v21 = vadd.s32 %v1796_v19, %v1792_v28  ;;  %v3398_v6 = vadd.f32 %v1523_v11, %v160_v45  ;;  %v3400_v52 = vand.u32 3, %v1723_v4 }
 0x184   :  { %v1620_v26 = vsel %vm3343_vm12, 0, %v3384_v49  ;;  %v3408_v57 = vsel %vm1842_vm14, %v1926_v10, %v3290_v8  ;;  %v2060_v48 = vand.u32 31, %v2058_v50  ;;  %v1733_v38 = vxor.u32 2147483648, %v3370_v34 }
 0x185   :  { %2325 = vcosq.f32 %v1619_v27  ;;  %v1913_v23 = vshll.u32 %v3306_v47, %v3337_v30  ;;  %v1798_v46 = vadd.s32 536870912, %v1797_v21  ;;  %v1730_v43 = vxor.u32 2147483648, %v3390_v22 }
 0x186   :  { %2327 = vsinq.f32 %v1619_v27  ;;  %v2054_v59 = vor.u32 8388608, %v2053_v16  ;;  %v2061_v5 = vsub.s32 32, %v2060_v48  ;;  %v1920_v1 = vand.u32 2147483647, %v1919_v25 }
 0x187   :  { %v1915_v35 = vor.u32 %v1914_v55, %v1913_v23  ;;  %v3414_v12 = vshrl.u32 %v1798_v46, 30  ;;  %v1946_v8 = vand.u32 2139095040, %v3398_v6  ;;  %v2063_v11 = vshll.u32 %v2370_v54, %v2060_v48 }
 0x188   :  { %v2064_v17 = vshrl.u32 %v2371_v58, %v2061_v5  ;;  %v2066_v9 = vshll.u32 %v2371_v58, %v2060_v48  ;;  %v2067_v47 = vshrl.u32 %v2372_v60, %v2061_v5  ;;  %v2059_v18 = vshrl.u32 %v2058_v50, 5 }
 0x189   :  { %v1800_v30 = vshll.u32 %v3414_v12, 30  ;;  %v2069_v4 = vshll.u32 %v2372_v60, %v2060_v48  ;;  %v2070_v10 = vshrl.u32 %v2373_v62, %v2061_v5  ;;  %v2072_v28 = vshll.u32 %v2373_v62, %v2060_v48 }
 0x18a   :  { %v2065_v15 = vor.u32 %v2064_v17, %v2063_v11  ;;  %v2068_v56 = vor.u32 %v2067_v47, %v2066_v9  ;;  %v2073_v27 = vshrl.u32 %v2374_v0, %v2061_v5  ;;  %vm1732_vm2 = vcmp.eq.s32.totalorder %v3400_v52, 2 }
 0x18b   :  { %vm3429_vm5 = vcmp.le.f32.partialorder %v1840_v31, 0.7853982  ;;  %v3433_v16 = vsub.s32 %v1797_v21, %v1800_v30  ;;  %v2071_v50 = vor.u32 %v2070_v10, %v2069_v4  ;;  %v2075_v45 = vshll.u32 %v2374_v0, %v2060_v48 }
 0x18c   :  { %v2076_v55 = vshrl.u32 %v3686_v7, %v2061_v5  ;;  %vm1729_vm1 = vcmp.eq.s32.totalorder %v3400_v52, 0  ;;  %v1922_v25 = vcvt.s32.f32 %v1915_v35  ;;  %v2074_v23 = vor.u32 %v2073_v27, %v2072_v28 }
 0x18d   :  { %v2094_v46 = vshll.u32 %v2054_v59, 8  ;;  %v1947_v11 = vshrl.u32 %v1946_v8, 23  ;;  %v1803_v17 = vsub.s32 0, %v3433_v16  ;;  %vm2078_vm3 = vcmp.lt.s32.totalorder %v2059_v18, 1 }
 0x18e   :  { %v2077_v9 = vor.u32 %v2076_v55, %v2075_v45  ;;  %vm2081_vm6 = vcmp.lt.s32.totalorder %v2059_v18, 4  ;;  %v1923_v31 = vmul.f32 %v1922_v25, %v1920_v1  ;;  %v2062_v21 = vshrl.u32 %v2370_v54, %v2061_v5 }
 0x18f   :  { %v2086_v47 = vsel %vm2078_vm3, %v2065_v15, %v2068_v56  ;;  %v2087_v30 = vsel %vm2081_vm6, %v2074_v23, 920167782  ;;  %v3441_v48 = vpop.eup %2325  ;;  %v2225_v4 = vmin.u32 %v1803_v17, %v3433_v16  ;;  %vm2080_vm7 = vcmp.lt.s32.totalorder %v2059_v18, 3 }
 0x190   :  { %v2083_v35 = vsel %vm2081_vm6, %v2071_v50, 2102212464  ;;  %v2090_v59 = vsel %vm2078_vm3, %v2068_v56, %v2071_v50  ;;  %v3445_v8 = vpop.eup %2327  ;;  %vm2079_vm8 = vcmp.lt.s32.totalorder %v2059_v18, 2  ;;  %v2088_v10 = vsel %vm2080_vm7, %v2071_v50, %v2087_v30 }
 0x191   :  { %v2091_v28 = vsel %vm2081_vm6, %v2077_v9, 1326507024  ;;  %v2232_v27 = vadd.s32 4294967169, %v1947_v11  ;;  %v1805_v1 = vclz %v2225_v4  ;;  %v2082_v5 = vsel %vm2078_vm3, %v2062_v21, %v2065_v15 }
 0x192   :  { %v2089_v45 = vsel %vm2079_vm8, %v2086_v47, %v2088_v10  ;;  %v2092_v55 = vsel %vm2080_vm7, %v2074_v23, %v2091_v28  ;;  %v2084_v25 = vsel %vm2080_vm7, %v2068_v56, %v2083_v35  ;;  %v1924_v51 = vxor.u32 2147483648, %v1923_v31 }
 0x193   :  { %v2093_v63 = vsel %vm2079_vm8, %v2090_v59, %v2092_v55  ;;  %v3450_v17 = vmul.u32.u64.low %v2094_v46, %v2089_v45  ;;  %v3451_v53 = vmul.u32.u64.high %v2094_v46, %v2089_v45, %v3450_v17  ;;  %v2226_v39 = vadd.s32 4294967294, %v1805_v1 }
 0x194   :  { %v3454_v3 = vmul.u32.u64.low %v2094_v46, %v2093_v63  ;;  %v3455_v7 = vmul.u32.u64.high %v2094_v46, %v2093_v63, %v3454_v3  ;;  %v3462_v15 = vsel %vm1732_vm2, %v1733_v38, %v3390_v22  ;;  %v3468_v56 = vand.u32 3, %v1620_v26  ;;  %v109_v63 = vpop.permute.xlu1 %108  ;;  %v104_v26 = vpop.permute.xlu0 %103 }
 0x195   :  { %v1929_v50 = vsel %vm3429_vm5, 0, %v3408_v57  ;;  %v1953_v23 = vadd.s32 1, %v2232_v27  ;;  %v3478_v3 = vsel %vm1729_vm1, %v3370_v34, %v1730_v43  ;;  %vm2227_vm9 = vcmp.lt.s32.totalorder %v2226_v39, 0 }
 0x196   :  { %v2085_v44 = vsel %vm2079_vm8, %v2082_v5, %v2084_v25  ;;  %v1943_v49 = vand.u32 2147483647, %v3398_v6  ;;  %v1793_v38 = vadd.s32 %v3356_v20, %v3365_v33  ;;  %v1808_v11 = vsel %vm2227_vm9, 0, %v2226_v39 }
 0x197   :  { %v2104_v9 = vadd.s32 1, %v3451_v53  ;;  %vm1954_vm0 = vcmp.gt.s32.totalorder %v1953_v23, 0  ;;  %v1925_v22 = vsel %vm1842_vm14, %v1924_v51, %v1923_v31  ;;  %v1809_v21 = vsub.s32 32, %v1808_v11 }
 0x198   :  { %v1813_v47 = vsub.s32 4294967266, %v1808_v11  ;;  %v1460_v34 = vmul.f32 %v109_v63, %v109_v63  ;;  %v2101_v43 = vmul.u32 %v2094_v46, %v2085_v44  ;;  %vm2103_vm10 = vc.u32 %v3455_v7, %v3450_v17 }
 0x199   :  { %v1955_v18 = vsel %vm1954_vm0, %v1953_v23, 0  ;;  %v1459_v30 = vmul.f32 %v104_v26, %v104_v26  ;;  %v1810_v4 = vshll.u32 %v3433_v16, %v1808_v11  ;;  %v1811_v35 = vshrl.u32 %v1793_v38, %v1809_v21 }
 0x19a   :  { %v1814_v20 = vadd.s32 127, %v1813_v47  ;;  %v2105_v39 = vsel %vm2103_vm10, %v2104_v9, %v3451_v53  ;;  %v1627_v33 = vxor.u32 2147483648, %v3445_v8  ;;  %v1630_v59 = vxor.u32 2147483648, %v3441_v48 }
 0x19b   :  { %v2106_v51 = vadd.s32 %v2105_v39, %v2101_v43  ;;  %v1957_v31 = vand.u32 31, %v1955_v18  ;;  %v1812_v10 = vor.u32 %v1811_v35, %v1810_v4  ;;  %v1950_v46 = vand.u32 8388607, %v1943_v49 }
 0x19c   :  { %v1815_v28 = vshll.u32 %v1814_v20, 23  ;;  %2329 = vrcp.f32 %v1460_v34  ;;  %v1928_v16 = vsel %vm3429_vm5, %v3150_v32, %v1925_v22  ;;  %vm1739_vm11 = vcmp.lt.s32.totalorder %v3247_v13, 0 }
 0x19d   :  { %v2107_v27 = vadd.s32 536870912, %v2106_v51  ;;  %v1958_v53 = vsub.s32 32, %v1957_v31  ;;  %2331 = vrcp.f32 %v1459_v30  ;;  %v1819_v5 = vcvt.s32.f32 %v1812_v10 }
 0x19e   :  { %v1816_v1 = vor.u32 4788187, %v1815_v28  ;;  %v1960_v45 = vshll.u32 %v2370_v54, %v1957_v31  ;;  %v1963_v55 = vshll.u32 %v2371_v58, %v1957_v31  ;;  %v1966_v44 = vshll.u32 %v2372_v60, %v1957_v31 }
 0x19f   :  { %v3501_v25 = vshrl.u32 %v2107_v27, 30  ;;  %v1961_v23 = vshrl.u32 %v2371_v58, %v1958_v53  ;;  %v1964_v63 = vshrl.u32 %v2372_v60, %v1958_v53  ;;  %vm3508_vm12 = vcmp.le.f32.partialorder %v1737_v37, 0.7853982 }
 0x1a0   :  { %v1817_v38 = vand.u32 2147483647, %v1816_v1  ;;  %v1967_v11 = vshrl.u32 %v2373_v62, %v1958_v53  ;;  %v1969_v9 = vshll.u32 %v2373_v62, %v1957_v31  ;;  %v1970_v22 = vshrl.u32 %v2374_v0, %v1958_v53 }
 0x1a1   :  { %v2109_v21 = vshll.u32 %v3501_v25, 30  ;;  %v1956_v58 = vshrl.u32 %v1955_v18, 5  ;;  %v1962_v47 = vor.u32 %v1961_v23, %v1960_v45  ;;  %v1965_v34 = vor.u32 %v1964_v63, %v1963_v55  ;;  %v119_v18 = vpop.permute.xlu1 %118 }
 0x1a2   :  { %v1820_v43 = vmul.f32 %v1819_v5, %v1817_v38  ;;  %v1968_v60 = vor.u32 %v1967_v11, %v1966_v44  ;;  %v1971_v30 = vor.u32 %v1970_v22, %v1969_v9  ;;  %v3707_v4 = vmov 1326507024   ;;  %v114_v22 = vpop.permute.xlu0 %113 }
 0x1a3   :  { %v1973_v37 = vshrl.u32 %v3707_v4, %v1958_v53  ;;  %2333 = vcosq.f32 %v1928_v16  ;;  %v3517_v35 = vsub.s32 %v2106_v51, %v2109_v21  ;;  %v1951_v20 = vor.u32 8388608, %v1950_v46 }
 0x1a4   :  { %v1972_v39 = vshll.u32 %v2374_v0, %v1957_v31  ;;  %2335 = vsinq.f32 %v1928_v16  ;;  %v1821_v62 = vxor.u32 2147483648, %v1820_v43  ;;  %v1823_v10 = vsub.s32 4, %v3414_v12 }
 0x1a5   :  { %v1959_v28 = vshrl.u32 %v2370_v54, %v1958_v53  ;;  %v2112_v27 = vsub.s32 0, %v3517_v35  ;;  %vm1975_vm13 = vcmp.lt.s32.totalorder %v1956_v58, 1  ;;  %vm1978_vm14 = vcmp.lt.s32.totalorder %v1956_v58, 4 }
 0x1a6   :  { %v1974_v1 = vor.u32 %v1973_v37, %v1972_v39  ;;  %v2330_v5 = vpop.eup %2329  ;;  %v1822_v51 = vsel %vm1739_vm11, %v1821_v62, %v1820_v43  ;;  %v1980_v46 = vsel %vm1978_vm14, %v1968_v60, 2102212464  ;;  %v1983_v0 = vsel %vm1975_vm13, %v1962_v47, %v1965_v34 }
 0x1a7   :  { %v1984_v31 = vsel %vm1978_vm14, %v1971_v30, 920167782  ;;  %v2332_v16 = vpop.eup %2331  ;;  %vm1629_vm15 = vcmp.eq.s32.totalorder %v3468_v56, 2  ;;  %v2237_v54 = vmin.u32 %v2112_v27, %v3517_v35  ;;  %vm1977_vm4 = vcmp.lt.s32.totalorder %v1956_v58, 3 }
 0x1a8   :  { %v1991_v53 = vshll.u32 %v1951_v20, 8  ;;  %v1462_v45 = vmul.f32 %v119_v18, %v119_v18  ;;  %vm1976_vm2 = vcmp.lt.s32.totalorder %v1956_v58, 2  ;;  %v1979_v55 = vsel %vm1975_vm13, %v1959_v28, %v1962_v47 }
 0x1a9   :  { %v1981_v23 = vsel %vm1977_vm4, %v1965_v34, %v1980_v46  ;;  %v1985_v63 = vsel %vm1977_vm4, %v1968_v60, %v1984_v31  ;;  %v1825_v44 = vsel %vm3508_vm12, %v3247_v13, %v1822_v51  ;;  %v2102_v38 = vadd.s32 %v3450_v17, %v3455_v7 }
 0x1aa   :  { %v2114_v11 = vclz %v2237_v54  ;;  %v1986_v9 = vsel %vm1976_vm2, %v1983_v0, %v1985_v63  ;;  %vm1626_vm1 = vcmp.eq.s32.totalorder %v3468_v56, 0  ;;  %v1987_v21 = vsel %vm1975_vm13, %v1965_v34, %v1968_v60  ;;  %v129_v54 = vpop.permute.xlu1 %128 }
 0x1ab   :  { %v1988_v47 = vsel %vm1978_vm14, %v1974_v1, 1326507024  ;;  %v3542_v43 = vmul.u32.u64.low %v1991_v53, %v1986_v9  ;;  %v3543_v4 = vmul.u32.u64.high %v1991_v53, %v1986_v9, %v3542_v43  ;;  %v1982_v20 = vsel %vm1976_vm2, %v1979_v55, %v1981_v23 }
 0x1ac   :  { %v2238_v37 = vadd.s32 4294967294, %v2114_v11  ;;  %v1989_v39 = vsel %vm1977_vm4, %v1971_v30, %v1988_v47  ;;  %v1468_v7 = vmul.f32 0.5, %v2330_v5  ;;  %v1466_v62 = vmul.f32 0.5, %v2332_v16 }
 0x1ad   :  { %v1990_v17 = vsel %vm1976_vm2, %v1987_v21, %v1989_v39  ;;  %2337 = vrcp.f32 %v1462_v45  ;;  %v1461_v28 = vmul.f32 %v114_v22, %v114_v22  ;;  %v3549_v18 = vpop.eup %2333  ;;  %v3708_v27 = vsub.f32 0.0, %v3287_v24 }
 0x1ae   :  { %vm2239_vm3 = vcmp.lt.s32.totalorder %v2238_v37, 0  ;;  %v3551_v34 = vmul.u32.u64.low %v1991_v53, %v1990_v17  ;;  %v3552_v60 = vmul.u32.u64.high %v1991_v53, %v1990_v17, %v3551_v34  ;;  %v3556_v51 = vpop.eup %2335  ;;  %v2001_v30 = vadd.s32 1, %v3543_v4 }
 0x1af   :  { %v1502_v1 = vmul.f32 %v3708_v27, %v1468_v7  ;;  %v2117_v46 = vsel %vm2239_vm3, 0, %v2238_v37  ;;  %v3709_v58 = vsub.f32 0.0, %v3007_v40  ;;  %2339 = vrcp.f32 %v1461_v28 }
 0x1b0   :  { %2341 = vcosq.f32 %v1825_v44  ;;  %v2118_v0 = vsub.s32 32, %v2117_v46  ;;  %v2122_v31 = vsub.s32 4294967266, %v2117_v46  ;;  %v1631_v24 = vsel %vm1629_vm15, %v1630_v59, %v3445_v8 }
 0x1b1   :  { %v1501_v5 = vmul.f32 %v3709_v58, %v1466_v62  ;;  %v1509_v16 = vmul.f32 1.442695, %v1502_v1  ;;  %2343 = vsinq.f32 %v1825_v44  ;;  %v2119_v45 = vshll.u32 %v3517_v35, %v2117_v46 }
 0x1b2   :  { %v1998_v55 = vmul.u32 %v1991_v53, %v1982_v20  ;;  %v2120_v23 = vshrl.u32 %v2102_v38, %v2118_v0  ;;  %v2123_v63 = vadd.s32 127, %v2122_v31  ;;  %vm2000_vm6 = vc.u32 %v3552_v60, %v3542_v43 }
 0x1b3   :  { %v1507_v40 = vmul.f32 1.442695, %v1501_v5  ;;  %v1824_v11 = vsel %vm1739_vm11, %v1823_v10, %v3414_v12  ;;  %v2002_v9 = vsel %vm2000_vm6, %v2001_v30, %v3543_v4  ;;  %2345 = vpow2.f32 %v1509_v16 }
 0x1b4   :  { %v1464_v59 = vmul.f32 %v129_v54, %v129_v54  ;;  %v1628_v35 = vsel %vm1626_vm1, %v3441_v48, %v1627_v33  ;;  %v2121_v53 = vor.u32 %v2120_v23, %v2119_v45  ;;  %v2124_v44 = vshll.u32 %v2123_v63, 23 }
 0x1b5   :  { %v2003_v38 = vadd.s32 %v2002_v9, %v1998_v55  ;;  %vm1726_vm7 = vweird.f32 %v3131_v41  ;;  %vm1728_vm8 = vcmp.lt.s32.totalorder %v3400_v52, 2  ;;  %vm1625_vm9 = vcmp.lt.s32.totalorder %v3468_v56, 2 }
 0x1b6   :  { %v3587_v12 = vand.u32 3, %v1929_v50  ;;  %v1826_v8 = vsel %vm3508_vm12, 0, %v1824_v11  ;;  %v2125_v10 = vor.u32 4788187, %v2124_v44  ;;  %2347 = vpow2.f32 %v1507_v40  ;;  %v124_v40 = vpop.permute.xlu0 %123 }
 0x1b7   :  { %v2004_v48 = vadd.s32 536870912, %v2003_v38  ;;  %v2338_v33 = vpop.eup %2337  ;;  %v1735_v22 = vsel %vm1728_vm8, %v3478_v3, %v3462_v15  ;;  %vm1623_vm0 = vweird.f32 %v3133_v42  ;;  %v1632_v52 = vsel %vm1625_vm9, %v1628_v35, %v1631_v24 }
 0x1b8   :  { %2349 = vrcp.f32 %v1464_v59  ;;  %v2126_v56 = vand.u32 2147483647, %v2125_v10  ;;  %v2128_v19 = vcvt.s32.f32 %v2121_v53  ;;  %v1472_v57 = vmul.f32 0.5, %v2338_v33 }
 0x1b9   :  { %v3594_v21 = vshrl.u32 %v2004_v48, 30  ;;  %v2340_v50 = vpop.eup %2339  ;;  %v1830_v47 = vand.u32 3, %v1826_v8  ;;  %v3710_v26 = vand.u32 2147483647, %v3315_v14  ;;  %vm2048_vm10 = vcmp.lt.s32.totalorder %v3315_v14, 0 }
 0x1ba   :  { %vm2155_vm11 = vcmask 203776   ;;  %v2342_v15 = vpop.eup %2341  ;;  %vm1935_vm12 = vcmp.eq.s32.totalorder %v3587_v12, 0  ;;  %v2129_v3 = vmul.f32 %v2128_v19, %v2126_v56  ;;  %v3713_v20 = vsub.f32 0.0, %v3083_v36 }
 0x1bb   :  { %vm3598_vm5 = vcmp.le.f32.partialorder %v3710_v26, 0.7853982  ;;  %v2006_v37 = vshll.u32 %v3594_v21, 30  ;;  %v2344_v7 = vpop.eup %2343  ;;  %v1736_v17 = vsel %vm1726_vm7, nan, %v1735_v22  ;;  %v1633_v62 = vsel %vm1623_vm0, nan, %v1632_v52 }
 0x1bc   :  { %v1504_v39 = vmul.f32 %v3713_v20, %v1472_v57  ;;  %vm1938_vm13 = vcmp.eq.s32.totalorder %v3587_v12, 2  ;;  %v1470_v28 = vmul.f32 0.5, %v2340_v50  ;;  %v1939_v34 = vxor.u32 2147483648, %v3549_v18 }
 0x1bd   :  { %v2130_v27 = vxor.u32 2147483648, %v2129_v3  ;;  %v3613_v1 = vsub.s32 %v2003_v38, %v2006_v37  ;;  %v2346_v30 = vpop.eup %2345  ;;  %v1936_v36 = vxor.u32 2147483648, %v3556_v51  ;;  %vm1832_vm14 = vcmp.eq.s32.totalorder %v1830_v47, 0 }
 0x1be   :  { %v1513_v46 = vmul.f32 1.442695, %v1504_v39  ;;  %v2132_v58 = vsub.s32 4, %v3501_v25  ;;  %v3714_v41 = vsub.f32 0.0, %v3109_v2  ;;  %v1836_v42 = vxor.u32 2147483648, %v2342_v15 }
 0x1bf   :  { %v2131_v0 = vsel %vm2048_vm10, %v2130_v27, %v2129_v3  ;;  %v2009_v31 = vsub.s32 0, %v3613_v1  ;;  %v2150_v16 = vmul.f32 %v2346_v30, %v1736_v17  ;;  %v1833_v54 = vxor.u32 2147483648, %v2344_v7 }
 0x1c0   :  { %v1503_v5 = vmul.f32 %v3714_v41, %v1470_v28  ;;  %v2134_v24 = vsel %vm3598_vm5, %v3315_v14, %v2131_v0  ;;  %2351 = vpow2.f32 %v1513_v46  ;;  %v2348_v55 = vpop.eup %2347  ;;  %v1940_v2 = vsel %vm1938_vm13, %v1939_v34, %v3556_v51 }
 0x1c1   :  { %2353 = vcosq.f32 %v2134_v24  ;;  %v2233_v23 = vmin.u32 %v2009_v31, %v3613_v1  ;;  %2157 = vst.msk [vmem:[%s3684_s6 + $0x8] sm:$0xff] %vm2155_vm11, %v2150_v16  ;;  %v1500_v63 = vsub.f32 0.0, %v3143_v61  ;;  %v1937_v9 = vsel %vm1935_vm12, %v3549_v18, %v1936_v36 }
 0x1c2   :  { %v1511_v45 = vmul.f32 1.442695, %v1503_v5  ;;  %v2350_v11 = vpop.eup %2349  ;;  %v2133_v51 = vsel %vm2048_vm10, %v2132_v58, %v3501_v25  ;;  %2355 = vsinq.f32 %v2134_v24  ;;  %v2149_v59 = vmul.f32 %v2348_v55, %v1633_v62 }
 0x1c3   :  { %vm1835_vm15 = vcmp.eq.s32.totalorder %v1830_v47, 2  ;;  %v2011_v35 = vclz %v2233_v23  ;;  %v1476_v53 = vmul.f32 0.5, %v2350_v11  ;;  %vm1934_vm4 = vcmp.lt.s32.totalorder %v3587_v12, 2 }
 0x1c4   :  { %2357 = vpow2.f32 %v1511_v45  ;;  %v1834_v61 = vsel %vm1832_vm14, %v2342_v15, %v1833_v54  ;;  %v1837_v44 = vsel %vm1835_vm15, %v1836_v42, %v2344_v7  ;;  %2156 = vst.msk [vmem:[%s3684_s6] sm:$0xff] %vm2155_vm11, %v2149_v59  ;;  %v1463_v18 = vmul.f32 %v124_v40, %v124_v40 }
 0x1c5   :  { %v1941_v38 = vsel %vm1934_vm4, %v1937_v9, %v1940_v2  ;;  %v2135_v25 = vsel %vm3598_vm5, 0, %v2133_v51  ;;  %v2234_v8 = vadd.s32 4294967294, %v2011_v35  ;;  %v1506_v10 = vmul.f32 %v1500_v63, %v1476_v53 }
 0x1c6   :  { %vm1932_vm2 = vweird.f32 %v3150_v32  ;;  %vm1831_vm1 = vcmp.lt.s32.totalorder %v1830_v47, 2  ;;  %vm1829_vm3 = vweird.f32 %v3247_v13  ;;  %v2139_v22 = vand.u32 3, %v2135_v25 }
 0x1c7   :  { %v1838_v12 = vsel %vm1831_vm1, %v1834_v61, %v1837_v44  ;;  %vm2235_vm6 = vcmp.lt.s32.totalorder %v2234_v8, 0  ;;  %v1517_v48 = vmul.f32 1.442695, %v1506_v10  ;;  %v1942_v33 = vsel %vm1932_vm2, nan, %v1941_v38 }
 0x1c8   :  { %v2014_v52 = vsel %vm2235_vm6, 0, %v2234_v8  ;;  %2359 = vrcp.f32 %v1463_v18  ;;  %v1999_v56 = vadd.s32 %v3542_v43, %v3552_v60  ;;  %v1839_v26 = vsel %vm1829_vm3, nan, %v1838_v12 }
 0x1c9   :  { %v2015_v19 = vsub.s32 32, %v2014_v52  ;;  %v2019_v57 = vsub.s32 4294967266, %v2014_v52  ;;  %2361 = vpow2.f32 %v1517_v48  ;;  %v2016_v32 = vshll.u32 %v3613_v1, %v2014_v52 }
 0x1ca   :  { %v2352_v50 = vpop.eup %2351  ;;  %vm2144_vm7 = vcmp.eq.s32.totalorder %v2139_v22, 2  ;;  %vm2141_vm8 = vcmp.eq.s32.totalorder %v2139_v22, 0  ;;  %vm2140_vm9 = vcmp.lt.s32.totalorder %v2139_v22, 2  ;;  %vm2138_vm0 = vweird.f32 %v3315_v14 }
 0x1cb   :  { %v2354_v4 = vpop.eup %2353  ;;  %v2017_v47 = vshrl.u32 %v1999_v56, %v2015_v19  ;;  %v2020_v13 = vadd.s32 127, %v2019_v57  ;;  %v2152_v15 = vmul.f32 %v2352_v50, %v1942_v33  ;;  %v1499_v41 = vsub.f32 0.0, %v3182_v29 }
 0x1cc   :  { %v2356_v3 = vpop.eup %2355  ;;  %v2145_v37 = vxor.u32 2147483648, %v2354_v4  ;;  %vm1945_vm5 = vcmp.lt.s32.totalorder %v3398_v6, 0  ;;  %vm1944_vm10 = vcmp.le.f32.partialorder %v1943_v49, 0.7853982  ;;  %v2029_v31 = vsub.s32 4, %v3594_v21 }
 0x1cd   :  { %v2142_v39 = vxor.u32 2147483648, %v2356_v3  ;;  %v2018_v7 = vor.u32 %v2017_v47, %v2016_v32  ;;  %v2021_v17 = vshll.u32 %v2020_v13, 23  ;;  %2159 = vst.msk [vmem:[%s3684_s6 + $0x18] sm:$0xff] %vm2155_vm11, %v2152_v15  ;;  %vm2035_vm15 = vweird.f32 %v3398_v6 }
 0x1ce   :  { %v2358_v20 = vpop.eup %2357  ;;  %v2146_v43 = vsel %vm2144_vm7, %v2145_v37, %v2356_v3  ;;  %v2030_v29 = vsel %vm1945_vm5, %v2029_v31, %v3594_v21 }
 0x1cf   :  { %v2151_v60 = vmul.f32 %v2358_v20, %v1839_v26  ;;  %v2143_v62 = vsel %vm2141_vm8, %v2354_v4, %v2142_v39  ;;  %v2022_v28 = vor.u32 4788187, %v2021_v17  ;;  %v2025_v46 = vcvt.s32.f32 %v2018_v7 }
 0x1d0   :  { %v2147_v34 = vsel %vm2140_vm9, %v2143_v62, %v2146_v43  ;;  %v2032_v45 = vsel %vm1944_vm10, 0, %v2030_v29 }
 0x1d1   :  { %2158 = vst.msk [vmem:[%s3684_s6 + $0x10] sm:$0xff] %vm2155_vm11, %v2151_v60  ;;  %v2148_v27 = vsel %vm2138_vm0, nan, %v2147_v34  ;;  %v2023_v1 = vand.u32 2147483647, %v2022_v28  ;;  %v2036_v55 = vand.u32 3, %v2032_v45 }
 0x1d2   :  { %v2360_v30 = vpop.eup %2359 }
 0x1d3   :  { %v2362_v36 = vpop.eup %2361  ;;  %v2026_v58 = vmul.f32 %v2025_v46, %v2023_v1  ;;  %v1474_v0 = vmul.f32 0.5, %v2360_v30  ;;  %vm2041_vm12 = vcmp.eq.s32.totalorder %v2036_v55, 2  ;;  %vm2038_vm13 = vcmp.eq.s32.totalorder %v2036_v55, 0 }
 0x1d4   :  { %v2154_v5 = vmul.f32 %v2362_v36, %v2148_v27  ;;  %vm2037_vm14 = vcmp.lt.s32.totalorder %v2036_v55, 2 }
 0x1d5   :  { %v2027_v42 = vxor.u32 2147483648, %v2026_v58  ;;  %v1505_v16 = vmul.f32 %v1499_v41, %v1474_v0 }
 0x1d6   :  { %2161 = vst.msk [vmem:[%s3684_s6 + $0x28] sm:$0xff] %vm2155_vm11, %v2154_v5 }
 0x1d7   :  { %v2028_v14 = vsel %vm1945_vm5, %v2027_v42, %v2026_v58  ;;  %v1515_v24 = vmul.f32 1.442695, %v1505_v16 }
 0x1d8   :  { %v2031_v54 = vsel %vm1944_vm10, %v3398_v6, %v2028_v14 }
 0x1d9   :  { %2363 = vcosq.f32 %v2031_v54 }
 0x1da   :  { %2365 = vsinq.f32 %v2031_v54 }
 0x1db   :  { %2367 = vpow2.f32 %v1515_v24 }
 0x1e3   :  { %v2364_v2 = vpop.eup %2363 }
 0x1e4   :  { %v2366_v23 = vpop.eup %2365  ;;  %v2042_v63 = vxor.u32 2147483648, %v2364_v2 }
 0x1e5   :  { %v2039_v40 = vxor.u32 2147483648, %v2366_v23  ;;  %v2368_v51 = vpop.eup %2367 }
 0x1e6   :  { %v2043_v49 = vsel %vm2041_vm12, %v2042_v63, %v2366_v23 }
 0x1e7   :  { %v2040_v11 = vsel %vm2038_vm13, %v2364_v2, %v2039_v40 }
 0x1e8   :  { %v2044_v9 = vsel %vm2037_vm14, %v2040_v11, %v2043_v49 }
 0x1e9   :  { %v2045_v59 = vsel %vm2035_vm15, nan, %v2044_v9 }
 0x1ea   :  { %v2153_v35 = vmul.f32 %v2368_v51, %v2045_v59 }
 0x1ec   :  { %2160 = vst.msk [vmem:[%s3684_s6 + $0x20] sm:$0xff] %vm2155_vm11, %v2153_v35 }

</bundles_post_ra>
